<compile_context>
chip_gen: v6e
topology: v6e:2x2x1
jax: 0.10.0
libtpu: 0.0.40
codegen_flags: <defaults>
</compile_context>

<pallas_src>
import functools

import jax
import jax.numpy as jnp
from jax.experimental import pallas as pl
from jax.experimental.pallas import tpu as pltpu

BN_EPS = 1e-5
DILATIONS = (1, 2, 4)
# Matmul-operand dtype (accumulation is always f32 via preferred_element_type).
# bf16 is the recommended MXU operand dtype on v6e/v7x; set to jnp.float32 for
# bit-strict f32 parity with the PyTorch module.
MXU_DTYPE = jnp.bfloat16


# ---------------------------------------------------------------------------
# Pallas kernel
# ---------------------------------------------------------------------------
def _temporal_conv_block(h, w_ref, scale, shift, mask_prev, mask_next, d, residual):
    """One TemporalConvBlock in (channels, N = B*F*T) layout.

    Dilated Conv1d(k=3, padding=d, dilation=d) as three MXU dots (one per tap),
    eval-mode BatchNorm1d folded to scale/shift (conv bias pre-folded into `shift`
    by the wrapper), LeakyReLU(0.2), optional residual.

      h:            (Cin, N) f32 activations (time fastest along the lane axis).
      w_ref:        (3, Cout, Cin) MXU_DTYPE; taps multiply [x[t-d], x[t], x[t+d]].
      scale, shift: (Cout, 1) f32.   mask_prev, mask_next: (1, N) f32 tap validity.
    """
    n = h.shape[1]
    # XLU lane rotation; the columns that wrapped across a time-row / batch boundary
    # are exactly the ones the masks zero, so no padded line buffer is needed.
    h_prev = pltpu.roll(h, shift=d, axis=1) * mask_prev        # x[t-d], 0 where t < d
    h_next = pltpu.roll(h, shift=n - d, axis=1) * mask_next    # x[t+d], 0 where t >= T-d

    y = jnp.dot(w_ref[0], h_prev.astype(MXU_DTYPE), preferred_element_type=jnp.float32)
    y += jnp.dot(w_ref[1], h.astype(MXU_DTYPE), preferred_element_type=jnp.float32)
    y += jnp.dot(w_ref[2], h_next.astype(MXU_DTYPE), preferred_element_type=jnp.float32)

    y = y * scale + shift                  # folded BN affine (+ folded conv bias)
    y = jnp.maximum(y, 0.2 * y)            # LeakyReLU(0.2)
    if residual:                           # in_channels == out_channels
        y = y + h
    return y


def temporal_attention_kernel(x_ref, w1_ref, w2_ref, w3_ref, w4_ref, wg_ref,
                              bn_ref, cb_ref, mask_ref, out_ref, *, use_residual1):
    x = x_ref[...].astype(jnp.float32)      # (C, N): channels on sublanes, lane-dense N
    bn = bn_ref[...]                        # (H, 6) = [s1 t1 s2 t2 s3 t3]
    msk = mask_ref[...]                     # (6, N) = [p1 n1 p2 n2 p4 n4]

    h = _temporal_conv_block(x, w1_ref, bn[:, 0:1], bn[:, 1:2],
                             msk[0:1, :], msk[1:2, :], DILATIONS[0], use_residual1)
    h = _temporal_conv_block(h, w2_ref, bn[:, 2:3], bn[:, 3:4],
                             msk[2:3, :], msk[3:4, :], DILATIONS[1], True)
    h = _temporal_conv_block(h, w3_ref, bn[:, 4:5], bn[:, 5:6],
                             msk[4:5, :], msk[5:6, :], DILATIONS[2], True)

    # Final 1x1 convs (attention H->C, gate C->C) and the gated blend.
    # TODO(synk): the gate matmul (4x4 LHS) is mostly MXU padding; it could move to the
    # VPU as a few scalar-broadcast MACs if the bundle dump shows its pop latency on the
    # kernel tail.
    att = jnp.dot(w4_ref[...], h.astype(MXU_DTYPE),
                  preferred_element_type=jnp.float32) + cb_ref[:, 0:1]      # (C, N)
    gate = jax.nn.sigmoid(
        jnp.dot(wg_ref[...], x.astype(MXU_DTYPE),
                preferred_element_type=jnp.float32) + cb_ref[:, 1:2])       # (C, N)
    out_ref[...] = (x * gate + att * (1.0 - gate)).astype(out_ref.dtype)


# ---------------------------------------------------------------------------
# Wrapper
# ---------------------------------------------------------------------------
def _pack_params(params, T, N):
    """Fold/pack PyTorch-layout parameters into MXU-friendly kernel operands."""
    def taps(w):   # (Cout, Cin, 3) -> (3, Cout, Cin); tap k multiplies x[t + (k-1)*d]
        return jnp.transpose(w, (2, 0, 1)).astype(MXU_DTYPE)

    def bn_fold(gamma, beta, conv_bias, rmean, rvar):
        # Eval-mode BatchNorm1d folded to y*scale + shift, conv bias folded in.
        scale = gamma / jnp.sqrt(rvar + BN_EPS)
        return scale, beta + (conv_bias - rmean) * scale

    s1, t1 = bn_fold(params["g1"], params["be1"], params["b1"], params["rm1"], params["rv1"])
    s2, t2 = bn_fold(params["g2"], params["be2"], params["b2"], params["rm2"], params["rv2"])
    s3, t3 = bn_fold(params["g3"], params["be3"], params["b3"], params["rm3"], params["rv3"])
    bn = jnp.stack([s1, t1, s2, t2, s3, t3], axis=1).astype(jnp.float32)       # (H, 6)
    cb = jnp.stack([params["b4"], params["bg"]], axis=1).astype(jnp.float32)   # (C, 2)

    # Tap-validity masks per flattened column m = (b*F + f)*T + t.  T is the fastest
    # axis of the (B,C,F,T) -> (C, B*F*T) re-layout (by construction below); the masks
    # also stop conv taps from leaking across freq-row / batch boundaries and across
    # the pltpu.roll wrap-around.
    t_idx = jnp.arange(N, dtype=jnp.int32) % T
    rows = []
    for d in DILATIONS:
        rows.append(t_idx >= d)        # x[t-d] exists inside the same time row
        rows.append(t_idx < T - d)     # x[t+d] exists inside the same time row
    masks = jnp.stack(rows, axis=0).astype(jnp.float32)                         # (6, N)

    return [taps(params["w1"]), taps(params["w2"]), taps(params["w3"]),
            params["w4"].astype(MXU_DTYPE), params["wg"].astype(MXU_DTYPE),
            bn, cb, masks]


def temporal_attention(x_bcft, params):
    B, C, F, T = x_bcft.shape
    H = params["w1"].shape[0]
    N = B * F * T

    # Channels on sublanes, flattened (batch, freq, time) on lanes: every load, matmul
    # operand and store is lane-dense (N = 512 here).  One kernel invocation (no grid):
    # best on single-TC v5e/v6e and, at this tiny size, on v7x as well.
    x_cn = jnp.transpose(x_bcft, (1, 0, 2, 3)).reshape(C, N)
    packed = _pack_params(params, T, N)

    kernel = functools.partial(temporal_attention_kernel, use_residual1=(C == H))
    out = pl.pallas_call(
        kernel,
        out_shape=jax.ShapeDtypeStruct((C, N), x_bcft.dtype),
    )(x_cn, *packed)

    return jnp.transpose(out.reshape(C, B, F, T), (1, 0, 2, 3))


# ---------------------------------------------------------------------------
# Deterministic synthetic parameters (PyTorch-layout conv weights, eval-mode BN)
# ---------------------------------------------------------------------------
def init_params(key, channels, hidden_dim):
    keys = iter(jax.random.split(key, 16))

    def nrm(shape, scale):
        return (scale * jax.random.normal(next(keys), shape)).astype(jnp.float32)

    def bn_stats(n):   # fresh eval-mode running stats (PyTorch defaults)
        return jnp.zeros((n,), jnp.float32), jnp.ones((n,), jnp.float32)

    p = {}
    # TemporalConvBlock 1: Conv1d(C -> H, k=3, dilation=1) + BN + LeakyReLU(0.2)
    p["w1"], p["b1"] = nrm((hidden_dim, channels, 3), 0.3), nrm((hidden_dim,), 0.1)
    p["g1"], p["be1"] = 1.0 + nrm((hidden_dim,), 0.1), nrm((hidden_dim,), 0.05)
    p["rm1"], p["rv1"] = bn_stats(hidden_dim)
    # TemporalConvBlock 2: Conv1d(H -> H, k=3, dilation=2) + BN + LeakyReLU + residual
    p["w2"], p["b2"] = nrm((hidden_dim, hidden_dim, 3), 0.15), nrm((hidden_dim,), 0.1)
    p["g2"], p["be2"] = 1.0 + nrm((hidden_dim,), 0.1), nrm((hidden_dim,), 0.05)
    p["rm2"], p["rv2"] = bn_stats(hidden_dim)
    # TemporalConvBlock 3: Conv1d(H -> H, k=3, dilation=4) + BN + LeakyReLU + residual
    p["w3"], p["b3"] = nrm((hidden_dim, hidden_dim, 3), 0.15), nrm((hidden_dim,), 0.1)
    p["g3"], p["be3"] = 1.0 + nrm((hidden_dim,), 0.1), nrm((hidden_dim,), 0.05)
    p["rm3"], p["rv3"] = bn_stats(hidden_dim)
    # Attention 1x1 conv (H -> C) and gate 1x1 conv (C -> C)
    p["w4"], p["b4"] = nrm((channels, hidden_dim), 0.2), nrm((channels,), 0.1)
    p["wg"], p["bg"] = nrm((channels, channels), 0.3), nrm((channels,), 0.1)
    return p


# ---------------------------------------------------------------------------
# Pure-JAX reference (same math; applies the same MXU operand cast so the check
# validates the kernel implementation exactly -- set MXU_DTYPE = jnp.float32 for
# a strict f32 parity run).
# ---------------------------------------------------------------------------
def ref_temporal_attention(x_bcft, params, mxu_dtype=MXU_DTYPE):
    B, C, F, T = x_bcft.shape
    H = params["w1"].shape[0]
    x = jnp.transpose(x_bcft, (0, 2, 3, 1)).reshape(B * F, T, C)   # (rows, T, C)

    def q(a):
        return a.astype(mxu_dtype)

    def dconv(h, w, b, d):
        # PyTorch Conv1d(kernel_size=3, padding=d, dilation=d); w: (Cout, Cin, 3)
        n, t, _ = h.shape
        z = jnp.zeros((n, d, h.shape[2]), h.dtype)
        hp = jnp.concatenate([z, h[:, : t - d]], axis=1)    # x[t - d]
        hn = jnp.concatenate([h[:, d:], z], axis=1)         # x[t + d]

        def tap(a, wk):
            return jnp.einsum("nti,oi->nto", q(a), q(wk),
                              preferred_element_type=jnp.float32)

        return tap(hp, w[:, :, 0]) + tap(h, w[:, :, 1]) + tap(hn, w[:, :, 2]) + b

    def tcb(h, w, b, gamma, beta, rm, rv, d, residual):      # TemporalConvBlock
        y = dconv(h, w, b, d)
        y = (y - rm) * (gamma / jnp.sqrt(rv + BN_EPS)) + beta  # BN eval mode
        y = jnp.where(y >= 0, y, 0.2 * y)                      # LeakyReLU(0.2)
        return y + h if residual else y

    h = tcb(x, params["w1"], params["b1"], params["g1"], params["be1"],
            params["rm1"], params["rv1"], 1, C == H)
    h = tcb(h, params["w2"], params["b2"], params["g2"], params["be2"],
            params["rm2"], params["rv2"], 2, True)
    h = tcb(h, params["w3"], params["b3"], params["g3"], params["be3"],
            params["rm3"], params["rv3"], 4, True)

    att = jnp.einsum("nth,oh->nto", q(h), q(params["w4"]),
                     preferred_element_type=jnp.float32) + params["b4"]
    gate = jax.nn.sigmoid(
        jnp.einsum("nti,oi->nto", q(x), q(params["wg"]),
                   preferred_element_type=jnp.float32) + params["bg"])
    enh = x * gate + att * (1.0 - gate)
    return jnp.transpose(enh.reshape(B, F, T, C), (0, 3, 1, 2))


# ---------------------------------------------------------------------------
if __name__ == "__main__":
    B, C, F, T = 2, 4, 16, 16      # batch, channels, freq, time
    HIDDEN = 32

    key = jax.random.PRNGKey(0)
    k_x, k_p = jax.random.split(key)
    x = jax.random.normal(k_x, (B, C, F, T), dtype=jnp.float32)
    params = init_params(k_p, C, HIDDEN)

    out = jax.block_until_ready(temporal_attention(x, params))
    assert out.shape == (B, C, F, T), out.shape

    ref = jax.block_until_ready(ref_temporal_attention(x, params))
    max_err = float(jnp.max(jnp.abs(out - ref)))
    assert jnp.allclose(out, ref, atol=2e-2, rtol=2e-2), max_err

    print("KERNEL_OK")
</pallas_src>

<mosaic_0001>
module attributes {stable_mosaic.version = 11 : i64} {
  func.func @temporal_attention_kernel(%arg0: memref<4x512xf32, #tpu.memory_space<vmem>>, %arg1: memref<3x32x4xbf16, #tpu.memory_space<vmem>>, %arg2: memref<3x32x32xbf16, #tpu.memory_space<vmem>>, %arg3: memref<3x32x32xbf16, #tpu.memory_space<vmem>>, %arg4: memref<4x32xbf16, #tpu.memory_space<vmem>>, %arg5: memref<4x4xbf16, #tpu.memory_space<vmem>>, %arg6: memref<32x6xf32, #tpu.memory_space<vmem>>, %arg7: memref<4x2xf32, #tpu.memory_space<vmem>>, %arg8: memref<6x512xf32, #tpu.memory_space<vmem>>, %arg9: memref<4x512xf32, #tpu.memory_space<vmem>>) attributes {dimension_semantics = [], scalar_prefetch = 0 : i64, scratch_operands = 0 : i64, tpu.core_type = #tpu.core_type<tc>} {
    %c0 = arith.constant 0 : index
    %c0_0 = arith.constant 0 : index
    %0 = vector.load %arg0[%c0, %c0_0] : memref<4x512xf32, #tpu.memory_space<vmem>>, vector<4x512xf32>
    %c0_1 = arith.constant 0 : index
    %c0_2 = arith.constant 0 : index
    %1 = vector.load %arg6[%c0_1, %c0_2] : memref<32x6xf32, #tpu.memory_space<vmem>>, vector<32x6xf32>
    %c0_3 = arith.constant 0 : index
    %c0_4 = arith.constant 0 : index
    %2 = vector.load %arg8[%c0_3, %c0_4] : memref<6x512xf32, #tpu.memory_space<vmem>>, vector<6x512xf32>
    %3 = vector.extract_strided_slice %1 {offsets = [0, 0], sizes = [32, 1], strides = [1, 1]} : vector<32x6xf32> to vector<32x1xf32>
    %4 = vector.extract_strided_slice %1 {offsets = [0, 1], sizes = [32, 1], strides = [1, 1]} : vector<32x6xf32> to vector<32x1xf32>
    %5 = vector.extract_strided_slice %2 {offsets = [0, 0], sizes = [1, 512], strides = [1, 1]} : vector<6x512xf32> to vector<1x512xf32>
    %6 = vector.extract_strided_slice %2 {offsets = [1, 0], sizes = [1, 512], strides = [1, 1]} : vector<6x512xf32> to vector<1x512xf32>
    %c1_i32 = arith.constant 1 : i32
    %7 = tpu.dynamic_rotate %0 by %c1_i32 dim 1 : vector<4x512xf32>, i32 -> vector<4x512xf32>
    %8 = vector.broadcast %5 : vector<1x512xf32> to vector<4x512xf32>
    %9 = arith.mulf %7, %8 : vector<4x512xf32>
    %c511_i32 = arith.constant 511 : i32
    %10 = tpu.dynamic_rotate %0 by %c511_i32 dim 1 : vector<4x512xf32>, i32 -> vector<4x512xf32>
    %11 = vector.broadcast %6 : vector<1x512xf32> to vector<4x512xf32>
    %12 = arith.mulf %10, %11 : vector<4x512xf32>
    %c0_5 = arith.constant 0 : index
    %c0_6 = arith.constant 0 : index
    %c0_7 = arith.constant 0 : index
    %13 = vector.load %arg1[%c0_5, %c0_6, %c0_7] : memref<3x32x4xbf16, #tpu.memory_space<vmem>>, vector<1x32x4xbf16>
    %14 = vector.shape_cast %13 : vector<1x32x4xbf16> to vector<32x4xbf16>
    %15 = arith.truncf %9 : vector<4x512xf32> to vector<4x512xbf16>
    %cst = arith.constant dense<0.000000e+00> : vector<32x512xf32>
    %16 = tpu.matmul %14, %15, %cst {dimension_numbers = #tpu.dot_dimension_numbers<[1], [0], [0], [1], [0, 0, 1, 1], [], []>} : vector<32x4xbf16>, vector<4x512xbf16>, vector<32x512xf32> -> vector<32x512xf32>
    %c1 = arith.constant 1 : index
    %c0_8 = arith.constant 0 : index
    %c0_9 = arith.constant 0 : index
    %17 = vector.load %arg1[%c1, %c0_8, %c0_9] : memref<3x32x4xbf16, #tpu.memory_space<vmem>>, vector<1x32x4xbf16>
    %18 = vector.shape_cast %17 : vector<1x32x4xbf16> to vector<32x4xbf16>
    %19 = arith.truncf %0 : vector<4x512xf32> to vector<4x512xbf16>
    %cst_10 = arith.constant dense<0.000000e+00> : vector<32x512xf32>
    %20 = tpu.matmul %18, %19, %cst_10 {dimension_numbers = #tpu.dot_dimension_numbers<[1], [0], [0], [1], [0, 0, 1, 1], [], []>} : vector<32x4xbf16>, vector<4x512xbf16>, vector<32x512xf32> -> vector<32x512xf32>
    %21 = arith.addf %16, %20 : vector<32x512xf32>
    %c2 = arith.constant 2 : index
    %c0_11 = arith.constant 0 : index
    %c0_12 = arith.constant 0 : index
    %22 = vector.load %arg1[%c2, %c0_11, %c0_12] : memref<3x32x4xbf16, #tpu.memory_space<vmem>>, vector<1x32x4xbf16>
    %23 = vector.shape_cast %22 : vector<1x32x4xbf16> to vector<32x4xbf16>
    %24 = arith.truncf %12 : vector<4x512xf32> to vector<4x512xbf16>
    %cst_13 = arith.constant dense<0.000000e+00> : vector<32x512xf32>
    %25 = tpu.matmul %23, %24, %cst_13 {dimension_numbers = #tpu.dot_dimension_numbers<[1], [0], [0], [1], [0, 0, 1, 1], [], []>} : vector<32x4xbf16>, vector<4x512xbf16>, vector<32x512xf32> -> vector<32x512xf32>
    %26 = arith.addf %21, %25 : vector<32x512xf32>
    %27 = vector.broadcast %3 : vector<32x1xf32> to vector<32x512xf32>
    %28 = arith.mulf %26, %27 : vector<32x512xf32>
    %29 = vector.broadcast %4 : vector<32x1xf32> to vector<32x512xf32>
    %30 = arith.addf %28, %29 : vector<32x512xf32>
    %cst_14 = arith.constant 2.000000e-01 : f32
    %31 = vector.broadcast %cst_14 : f32 to vector<32x512xf32>
    %32 = arith.mulf %31, %30 : vector<32x512xf32>
    %33 = arith.maximumf %30, %32 : vector<32x512xf32>
    %34 = vector.extract_strided_slice %1 {offsets = [0, 2], sizes = [32, 1], strides = [1, 1]} : vector<32x6xf32> to vector<32x1xf32>
    %35 = vector.extract_strided_slice %1 {offsets = [0, 3], sizes = [32, 1], strides = [1, 1]} : vector<32x6xf32> to vector<32x1xf32>
    %36 = vector.extract_strided_slice %2 {offsets = [2, 0], sizes = [1, 512], strides = [1, 1]} : vector<6x512xf32> to vector<1x512xf32>
    %37 = vector.extract_strided_slice %2 {offsets = [3, 0], sizes = [1, 512], strides = [1, 1]} : vector<6x512xf32> to vector<1x512xf32>
    %c2_i32 = arith.constant 2 : i32
    %38 = tpu.dynamic_rotate %33 by %c2_i32 dim 1 : vector<32x512xf32>, i32 -> vector<32x512xf32>
    %39 = vector.broadcast %36 : vector<1x512xf32> to vector<32x512xf32>
    %40 = arith.mulf %38, %39 : vector<32x512xf32>
    %c510_i32 = arith.constant 510 : i32
    %41 = tpu.dynamic_rotate %33 by %c510_i32 dim 1 : vector<32x512xf32>, i32 -> vector<32x512xf32>
    %42 = vector.broadcast %37 : vector<1x512xf32> to vector<32x512xf32>
    %43 = arith.mulf %41, %42 : vector<32x512xf32>
    %c0_15 = arith.constant 0 : index
    %c0_16 = arith.constant 0 : index
    %c0_17 = arith.constant 0 : index
    %44 = vector.load %arg2[%c0_15, %c0_16, %c0_17] : memref<3x32x32xbf16, #tpu.memory_space<vmem>>, vector<1x32x32xbf16>
    %45 = vector.shape_cast %44 : vector<1x32x32xbf16> to vector<32x32xbf16>
    %46 = arith.truncf %40 : vector<32x512xf32> to vector<32x512xbf16>
    %cst_18 = arith.constant dense<0.000000e+00> : vector<32x512xf32>
    %47 = tpu.matmul %45, %46, %cst_18 {dimension_numbers = #tpu.dot_dimension_numbers<[1], [0], [0], [1], [0, 0, 1, 1], [], []>} : vector<32x32xbf16>, vector<32x512xbf16>, vector<32x512xf32> -> vector<32x512xf32>
    %c1_19 = arith.constant 1 : index
    %c0_20 = arith.constant 0 : index
    %c0_21 = arith.constant 0 : index
    %48 = vector.load %arg2[%c1_19, %c0_20, %c0_21] : memref<3x32x32xbf16, #tpu.memory_space<vmem>>, vector<1x32x32xbf16>
    %49 = vector.shape_cast %48 : vector<1x32x32xbf16> to vector<32x32xbf16>
    %50 = arith.truncf %33 : vector<32x512xf32> to vector<32x512xbf16>
    %cst_22 = arith.constant dense<0.000000e+00> : vector<32x512xf32>
    %51 = tpu.matmul %49, %50, %cst_22 {dimension_numbers = #tpu.dot_dimension_numbers<[1], [0], [0], [1], [0, 0, 1, 1], [], []>} : vector<32x32xbf16>, vector<32x512xbf16>, vector<32x512xf32> -> vector<32x512xf32>
    %52 = arith.addf %47, %51 : vector<32x512xf32>
    %c2_23 = arith.constant 2 : index
    %c0_24 = arith.constant 0 : index
    %c0_25 = arith.constant 0 : index
    %53 = vector.load %arg2[%c2_23, %c0_24, %c0_25] : memref<3x32x32xbf16, #tpu.memory_space<vmem>>, vector<1x32x32xbf16>
    %54 = vector.shape_cast %53 : vector<1x32x32xbf16> to vector<32x32xbf16>
    %55 = arith.truncf %43 : vector<32x512xf32> to vector<32x512xbf16>
    %cst_26 = arith.constant dense<0.000000e+00> : vector<32x512xf32>
    %56 = tpu.matmul %54, %55, %cst_26 {dimension_numbers = #tpu.dot_dimension_numbers<[1], [0], [0], [1], [0, 0, 1, 1], [], []>} : vector<32x32xbf16>, vector<32x512xbf16>, vector<32x512xf32> -> vector<32x512xf32>
    %57 = arith.addf %52, %56 : vector<32x512xf32>
    %58 = vector.broadcast %34 : vector<32x1xf32> to vector<32x512xf32>
    %59 = arith.mulf %57, %58 : vector<32x512xf32>
    %60 = vector.broadcast %35 : vector<32x1xf32> to vector<32x512xf32>
    %61 = arith.addf %59, %60 : vector<32x512xf32>
    %cst_27 = arith.constant 2.000000e-01 : f32
    %62 = vector.broadcast %cst_27 : f32 to vector<32x512xf32>
    %63 = arith.mulf %62, %61 : vector<32x512xf32>
    %64 = arith.maximumf %61, %63 : vector<32x512xf32>
    %65 = arith.addf %64, %33 : vector<32x512xf32>
    %66 = vector.extract_strided_slice %1 {offsets = [0, 4], sizes = [32, 1], strides = [1, 1]} : vector<32x6xf32> to vector<32x1xf32>
    %67 = vector.extract_strided_slice %1 {offsets = [0, 5], sizes = [32, 1], strides = [1, 1]} : vector<32x6xf32> to vector<32x1xf32>
    %68 = vector.extract_strided_slice %2 {offsets = [4, 0], sizes = [1, 512], strides = [1, 1]} : vector<6x512xf32> to vector<1x512xf32>
    %69 = vector.extract_strided_slice %2 {offsets = [5, 0], sizes = [1, 512], strides = [1, 1]} : vector<6x512xf32> to vector<1x512xf32>
    %c4_i32 = arith.constant 4 : i32
    %70 = tpu.dynamic_rotate %65 by %c4_i32 dim 1 : vector<32x512xf32>, i32 -> vector<32x512xf32>
    %71 = vector.broadcast %68 : vector<1x512xf32> to vector<32x512xf32>
    %72 = arith.mulf %70, %71 : vector<32x512xf32>
    %c508_i32 = arith.constant 508 : i32
    %73 = tpu.dynamic_rotate %65 by %c508_i32 dim 1 : vector<32x512xf32>, i32 -> vector<32x512xf32>
    %74 = vector.broadcast %69 : vector<1x512xf32> to vector<32x512xf32>
    %75 = arith.mulf %73, %74 : vector<32x512xf32>
    %c0_28 = arith.constant 0 : index
    %c0_29 = arith.constant 0 : index
    %c0_30 = arith.constant 0 : index
    %76 = vector.load %arg3[%c0_28, %c0_29, %c0_30] : memref<3x32x32xbf16, #tpu.memory_space<vmem>>, vector<1x32x32xbf16>
    %77 = vector.shape_cast %76 : vector<1x32x32xbf16> to vector<32x32xbf16>
    %78 = arith.truncf %72 : vector<32x512xf32> to vector<32x512xbf16>
    %cst_31 = arith.constant dense<0.000000e+00> : vector<32x512xf32>
    %79 = tpu.matmul %77, %78, %cst_31 {dimension_numbers = #tpu.dot_dimension_numbers<[1], [0], [0], [1], [0, 0, 1, 1], [], []>} : vector<32x32xbf16>, vector<32x512xbf16>, vector<32x512xf32> -> vector<32x512xf32>
    %c1_32 = arith.constant 1 : index
    %c0_33 = arith.constant 0 : index
    %c0_34 = arith.constant 0 : index
    %80 = vector.load %arg3[%c1_32, %c0_33, %c0_34] : memref<3x32x32xbf16, #tpu.memory_space<vmem>>, vector<1x32x32xbf16>
    %81 = vector.shape_cast %80 : vector<1x32x32xbf16> to vector<32x32xbf16>
    %82 = arith.truncf %65 : vector<32x512xf32> to vector<32x512xbf16>
    %cst_35 = arith.constant dense<0.000000e+00> : vector<32x512xf32>
    %83 = tpu.matmul %81, %82, %cst_35 {dimension_numbers = #tpu.dot_dimension_numbers<[1], [0], [0], [1], [0, 0, 1, 1], [], []>} : vector<32x32xbf16>, vector<32x512xbf16>, vector<32x512xf32> -> vector<32x512xf32>
    %84 = arith.addf %79, %83 : vector<32x512xf32>
    %c2_36 = arith.constant 2 : index
    %c0_37 = arith.constant 0 : index
    %c0_38 = arith.constant 0 : index
    %85 = vector.load %arg3[%c2_36, %c0_37, %c0_38] : memref<3x32x32xbf16, #tpu.memory_space<vmem>>, vector<1x32x32xbf16>
    %86 = vector.shape_cast %85 : vector<1x32x32xbf16> to vector<32x32xbf16>
    %87 = arith.truncf %75 : vector<32x512xf32> to vector<32x512xbf16>
    %cst_39 = arith.constant dense<0.000000e+00> : vector<32x512xf32>
    %88 = tpu.matmul %86, %87, %cst_39 {dimension_numbers = #tpu.dot_dimension_numbers<[1], [0], [0], [1], [0, 0, 1, 1], [], []>} : vector<32x32xbf16>, vector<32x512xbf16>, vector<32x512xf32> -> vector<32x512xf32>
    %89 = arith.addf %84, %88 : vector<32x512xf32>
    %90 = vector.broadcast %66 : vector<32x1xf32> to vector<32x512xf32>
    %91 = arith.mulf %89, %90 : vector<32x512xf32>
    %92 = vector.broadcast %67 : vector<32x1xf32> to vector<32x512xf32>
    %93 = arith.addf %91, %92 : vector<32x512xf32>
    %cst_40 = arith.constant 2.000000e-01 : f32
    %94 = vector.broadcast %cst_40 : f32 to vector<32x512xf32>
    %95 = arith.mulf %94, %93 : vector<32x512xf32>
    %96 = arith.maximumf %93, %95 : vector<32x512xf32>
    %97 = arith.addf %96, %65 : vector<32x512xf32>
    %c0_41 = arith.constant 0 : index
    %c0_42 = arith.constant 0 : index
    %98 = vector.load %arg4[%c0_41, %c0_42] : memref<4x32xbf16, #tpu.memory_space<vmem>>, vector<4x32xbf16>
    %99 = arith.truncf %97 : vector<32x512xf32> to vector<32x512xbf16>
    %cst_43 = arith.constant dense<0.000000e+00> : vector<4x512xf32>
    %100 = tpu.matmul %98, %99, %cst_43 {dimension_numbers = #tpu.dot_dimension_numbers<[1], [0], [0], [1], [0, 0, 1, 1], [], []>} : vector<4x32xbf16>, vector<32x512xbf16>, vector<4x512xf32> -> vector<4x512xf32>
    %c0_44 = arith.constant 0 : index
    %c0_45 = arith.constant 0 : index
    %101 = vector.load %arg7[%c0_44, %c0_45] : memref<4x2xf32, #tpu.memory_space<vmem>>, vector<4x1xf32>
    %102 = vector.broadcast %101 : vector<4x1xf32> to vector<4x512xf32>
    %103 = arith.addf %100, %102 : vector<4x512xf32>
    %c0_46 = arith.constant 0 : index
    %c0_47 = arith.constant 0 : index
    %104 = vector.load %arg5[%c0_46, %c0_47] : memref<4x4xbf16, #tpu.memory_space<vmem>>, vector<4x4xbf16>
    %105 = arith.truncf %0 : vector<4x512xf32> to vector<4x512xbf16>
    %cst_48 = arith.constant dense<0.000000e+00> : vector<4x512xf32>
    %106 = tpu.matmul %104, %105, %cst_48 {dimension_numbers = #tpu.dot_dimension_numbers<[1], [0], [0], [1], [0, 0, 1, 1], [], []>} : vector<4x4xbf16>, vector<4x512xbf16>, vector<4x512xf32> -> vector<4x512xf32>
    %c0_49 = arith.constant 0 : index
    %c1_50 = arith.constant 1 : index
    %107 = vector.load %arg7[%c0_49, %c1_50] : memref<4x2xf32, #tpu.memory_space<vmem>>, vector<4x1xf32>
    %108 = vector.broadcast %107 : vector<4x1xf32> to vector<4x512xf32>
    %109 = arith.addf %106, %108 : vector<4x512xf32>
    %110 = arith.negf %109 : vector<4x512xf32>
    %111 = math.exp %110 : vector<4x512xf32>
    %cst_51 = arith.constant 1.000000e+00 : f32
    %112 = vector.broadcast %cst_51 : f32 to vector<4x512xf32>
    %113 = arith.addf %112, %111 : vector<4x512xf32>
    %114 = arith.divf %112, %113 : vector<4x512xf32>
    %115 = arith.mulf %0, %114 : vector<4x512xf32>
    %cst_52 = arith.constant 1.000000e+00 : f32
    %116 = vector.broadcast %cst_52 : f32 to vector<4x512xf32>
    %117 = arith.subf %116, %114 : vector<4x512xf32>
    %118 = arith.mulf %103, %117 : vector<4x512xf32>
    %119 = arith.addf %115, %118 : vector<4x512xf32>
    %c0_53 = arith.constant 0 : index
    %c0_54 = arith.constant 0 : index
    %120 = vector.load %arg9[%c0_53, %c0_54] : memref<4x512xf32, #tpu.memory_space<vmem>>, vector<4x512xf32>
    tpu.vector_store %arg9[%c0_53, %c0_54], %119 {strides = array<i32>} : memref<4x512xf32, #tpu.memory_space<vmem>>, vector<4x512xf32>,
    return
  }
}

</mosaic_0001>

<bundles_post_ra>
// kernel: tpu_custom_call.1
= control target key start
LH: loop header
LB: loop body
LE: loop exit
PB: predicated region body
PF: predicated region fallthrough
CT: control target
= control target key end

     0   :  { %14 = vsyncpa [#allocation3], 0  ;;  %s3531_s0 = inlined_call_operand.hbm [shape: f32[4,512], index: 0, kind: input, shape index: {}]   ;;  %s3532_s1 = inlined_call_operand.vmem [shape: bf16[3,32,4], index: 1, kind: input, shape index: {}]   ;;  %s3533_s2 = inlined_call_operand.vmem [shape: bf16[3,32,32], index: 2, kind: input, shape index: {}]   ;;  %s3534_s3 = inlined_call_operand.vmem [shape: bf16[3,32,32], index: 3, kind: input, shape index: {}]   ;;  %s3535_s4 = inlined_call_operand.vmem [shape: bf16[4,32], index: 4, kind: input, shape index: {}]   ;;  %s3536_s5 = inlined_call_operand.vmem [shape: bf16[4,4], index: 5, kind: input, shape index: {}]   ;;  %s3537_s6 = inlined_call_operand.vmem [shape: f32[32,6], index: 6, kind: input, shape index: {}]   ;;  %s3538_s7 = inlined_call_operand.vmem [shape: f32[4,2], index: 7, kind: input, shape index: {}]   ;;  %s3539_s8 = inlined_call_operand.hbm [shape: f32[6,512], index: 8, kind: input, shape index: {}]   ;;  %s3540_s9 = inlined_call_operand.hbm [shape: f32[4,512], index: 9, kind: output, shape index: {}]  }
   0x1   :  { %15 = vsyncpa [#allocation6], 0 }
   0x2   :  { %16 = vsyncpa [#allocation4], 0  ;;  %s2578_s30 = smov [#allocation2]   ;;  %s2579_s11 = smov [#allocation5]  }
   0x3   :  { %s23_s10 = sshll.u32 %s2578_s30, 4  ;;  %s47_s12 = sshll.u32 %s2579_s11, 4  ;;  %s24_s10 = int_to_ptr.vmem [resolvable:$true] %s23_s10  ;;  %s48_s12 = int_to_ptr.vmem [resolvable:$true] %s47_s12 }
   0x4   :  { %s2520_s13 = scalar_lea.vmem %s24_s10, 256  ;;  %p2525_p1 = scmp.lt.s32.totalorder %s24_s10, %s24_s10 }
   0x5   :  { %p2521_p0 = scmp.ne.s32.totalorder %s24_s10, %s2520_s13  ;;  %p2526_p2 = scmp.lt.s32.totalorder %s2520_s13, %s2520_s13 }
   0x7   :  { %p2527_p3 = por %p2526_p2, %p2525_p1 }
   0x9   :  { %p2528_p4 = pnand %p2527_p3, %p2521_p0 }
   0xb   :  { %2531 = shalt.err (!%p2528_p4)
}
   0xc   :  { %26 = dma.hbm_to_vmem [thread:$0]  %s3531_s0, 256, %s24_s10, [#allocation3]  }
   0xd   :  { %s2540_s16 = scalar_lea.vmem %s48_s12, 512  ;;  %p2545_p6 = scmp.lt.s32.totalorder %s48_s12, %s48_s12 }
   0xe   :  { %p2541_p5 = scmp.ne.s32.totalorder %s48_s12, %s2540_s16  ;;  %p2546_p7 = scmp.lt.s32.totalorder %s2540_s16, %s2540_s16 }
  0x10   :  { %p2547_p8 = por %p2546_p7, %p2545_p6 }
  0x12   :  { %p2548_p9 = pnand %p2547_p8, %p2541_p5 }
  0x14   :  { %2551 = shalt.err (!%p2548_p9)
}
  0x15   :  { %50 = dma.hbm_to_vmem [thread:$0]  %s3539_s8, 512, %s48_s12, [#allocation6]  }
  0x16   :  { %2572 = dma.done.wait [#allocation3], 256  }
  0x17   :  { %2573 = vsyncadd [#allocation3], 4294967040 }
  0x18   :  { %2574 = dma.done.wait [#allocation6], 512  }
  0x19   :  { %2575 = vsyncadd [#allocation6], 4294966784  ;;  %v3542_v0 = vmov 0   ;;  %v59_v1 = vld [vmem:[#allocation2 + $0x8] sm:$0xff]  ;;  %v58_v2 = vld [vmem:[#allocation2] sm:$0xff]  ;;  %s2581_s0 = smov 1   ;;  %v82_v18 = vlaneseq }
  0x1a   :  { %221 = vmatprep.mubr.bf16.mxu0 %v3542_v0  ;;  %274 = vmatprep.mubr.bf16.mxu1 %v3542_v0  ;;  %v71_v3 = vcombine.high %v59_v1, %v59_v1  ;;  %v70_v4 = vcombine.high %v58_v2, %v58_v2  ;;  %vm176_vm0 = vcmask 1041408   ;;  %v155_v5 = vpack.c.bf16 %v58_v2, %v58_v2  ;;  %v2468_v11 = vld [vmem:[%s3532_s1 + $0x10] sm:$0xff]   ;;  %s2582_s20 = smov 127   ;;  %v2469_v12 = vld [vmem:[%s3532_s1 + $0x18] sm:$0xff]   ;;  %v2702_v16 = vld [vmem:[%s3537_s6] sm:$0xff]  ;;  %s2585_s18 = smov 126  }
  0x1b   :  { %2447 = vset.pattern.permute.xlu1 %v3542_v0  ;;  %2446 = vset.pattern.permute.xlu0 %v3542_v0  ;;  %v157_v6 = vpack.c.bf16 %v59_v1, %v59_v1  ;;  %vm169_vm1 = vcmask 31744   ;;  %v2686_v13 = vld [vmem:[%s3537_s6 + $0x18] sm:$0xff]  ;;  %v2691_v14 = vld [vmem:[%s3537_s6 + $0x10] sm:$0xff]  ;;  %v3541_v15 = vmov 1   ;;  %v2710_v17 = vld [vmem:[%s3537_s6 + $0x8] sm:$0xff]  ;;  %v2715_v19 = vshrl.u32 %v82_v18, 7 }
  0x1c   :  { %78 = vrot.lane.b32.xlu1 %v59_v1, %s2581_s0  ;;  %74 = vrot.lane.b32.xlu0 %v58_v2, %s2581_s0  ;;  %v2653_v7 = vpack.c.bf16 %v70_v4, %v70_v4  ;;  %v2655_v8 = vpack.c.bf16 %v71_v3, %v71_v3  ;;  %v2658_v9 = vsel %vm176_vm0, %v155_v5, 0  ;;  %v2717_v20 = vand.u32 127, %v82_v18  ;;  %v2719_v21 = vld [vmem:[#allocation5] sm:$0x3f]  ;;  %v2722_v23 = vld [vmem:[#allocation5 + $0x18] sm:$0x3f] }
  0x1d   :  { %3581 = vst [vmem:[#allocation13_spill] sm:$0xff] %v2658_v9  ;;  %v2661_v10 = vsel %vm176_vm0, %v157_v6, 0  ;;  %3583 = vst [vmem:[#allocation15_spill] sm:$0xff] %v2715_v19  ;;  %v91_v22 = vsub.s32 0, %v2715_v19  ;;  %v2724_v24 = vld [vmem:[#allocation5 + $0x8] sm:$0x3f] }
  0x1e   :  { %3579 = vst [vmem:[#allocation11_spill] sm:$0xff] %v2653_v7  ;;  %3580 = vst [vmem:[#allocation12_spill] sm:$0xff] %v2655_v8  ;;  %2343 = vmatprep.subr.msk.bf16.mxu0 %vm176_vm0, %v2653_v7  ;;  %2346 = vmatprep.subr.msk.bf16.mxu1 %vm176_vm0, %v2655_v8  ;;  %v2726_v25 = vld [vmem:[#allocation5 + $0x10] sm:$0x3f]  ;;  %v124_v28 = vsub.s32 1, %v2715_v19  ;;  %vm84_vm2 = vcmp.lt.s32.totalorder %v2717_v20, 1 }
  0x1f   :  { %3582 = vst [vmem:[#allocation14_spill] sm:$0xff] %v2661_v10  ;;  %204 = vmatpush1.bf16.msra.mxu0 %v2658_v9  ;;  %257 = vmatpush1.bf16.msra.mxu1 %v2661_v10  ;;  %3584 = vst [vmem:[#allocation16_spill] sm:$0xff] %v2717_v20  ;;  %v92_v29 = vrot.slane %v2719_v21, %v91_v22  ;;  %v104_v30 = vrot.slane %v2722_v23, %v91_v22  ;;  %vm117_vm3 = vcmp.lt.s32.totalorder %v2717_v20, 127  ;;  %v2470_v56 = vld [vmem:[%s3532_s1] sm:$0xff]   ;;  %vm885_vm4 = vcmask 261120   ;;  %s2589_s29 = smov 124  }
  0x20   :  { %80 = vrot.lane.b32.xlu1 %v71_v3, %s2581_s0  ;;  %76 = vrot.lane.b32.xlu0 %v70_v4, %s2581_s0  ;;  %3585 = vst [vmem:[#allocation17_spill] sm:$0xff] %v2719_v21  ;;  %3586 = vst [vmem:[#allocation18_spill] sm:$0xff] %v2722_v23  ;;  %v96_v31 = vrot.slane %v2724_v24, %v91_v22  ;;  %v100_v32 = vrot.slane %v2726_v25, %v91_v22  ;;  %v2472_v22 = vld [vmem:[%s3532_s1 + $0x20] sm:$0xff]  }
  0x21   :  { %3587 = vst [vmem:[#allocation19_spill] sm:$0xff] %v2724_v24  ;;  %3588 = vst [vmem:[#allocation20_spill] sm:$0xff] %v2726_v25  ;;  %v125_v35 = vrot.slane %v2719_v21, %v124_v28  ;;  %v137_v51 = vrot.slane %v2722_v23, %v124_v28  ;;  %v129_v52 = vrot.slane %v2724_v24, %v124_v28 }
  0x22   :  { %2344 = vmatmul.mubr.msk.bf16.vlgmr.msra.gmra.mxu0 %vm169_vm1, %v2468_v11  ;;  %2347 = vmatmul.mubr.msk.bf16.vlgmr.msra.gmra.mxu1 %vm169_vm1, %v2468_v11  ;;  %v133_v57 = vrot.slane %v2726_v25, %v124_v28 }
  0x23   :  { %231 = vmatprep.mubr.bf16.mxu0 %v3542_v0  ;;  %284 = vmatprep.mubr.bf16.mxu1 %v3542_v0 }
  0x24   :  { %111 = vrot.lane.b32.xlu1 %v70_v4, %s2582_s20  ;;  %109 = vrot.lane.b32.xlu0 %v58_v2, %s2582_s20 }
  0x28   :  { %115 = vrot.lane.b32.xlu1 %v71_v3, %s2582_s20  ;;  %113 = vrot.lane.b32.xlu0 %v59_v1, %s2582_s20 }
  0x2a   :  { %2345 = vmatmul.mubr.msk.bf16.gmra.mxu0 %vm169_vm1, %v2469_v12  ;;  %2348 = vmatmul.mubr.msk.bf16.gmra.mxu1 %vm169_vm1, %v2469_v12  ;;  %v2471_v12 = vld [vmem:[%s3532_s1 + $0x8] sm:$0xff]  }
  0x2b   :  { %355 = vmatprep.mubr.bf16.mxu0 %v3542_v0  ;;  %408 = vmatprep.mubr.bf16.mxu1 %v3542_v0 }
  0x2c   :  { %605 = vperm.xlu1 %2447, %v2686_v13   ;;  %600 = vperm.xlu0 %2446, %v2691_v14  }
  0x30   :  { %2448 = vset.pattern.permute.xlu1 %v3541_v15  ;;  %2449 = vset.pattern.permute.xlu0 %v3541_v15 }
  0x31   :  { %633 = vperm.xlu1 %2448, %v2691_v14   ;;  %637 = vperm.xlu0 %2449, %v2686_v13  }
  0x35   :  { %2450 = vset.pattern.permute.xlu1 %v3542_v0  ;;  %625 = vperm.xlu0 %2449, %v2702_v16  }
  0x36   :  { %590 = vperm.xlu1 %2450, %v2702_v16  }
  0x3a   :  { %595 = vperm.xlu1 %2450, %v2710_v17  }
  0x3e   :  { %2451 = vset.pattern.permute.xlu1 %v3541_v15 }
  0x3f   :  { %629 = vperm.xlu1 %2451, %v2710_v17  }
  0x8e   :  { %v79_v26 = vpop.permute.xlu1 %78  ;;  %v75_v27 = vpop.permute.xlu0 %74 }
  0x92   :  { %v81_v33 = vpop.permute.xlu1 %80  ;;  %v77_v34 = vpop.permute.xlu0 %76 }
  0x93   :  { %v85_v36 = vsel %vm84_vm2, %v79_v26, %v81_v33  ;;  %v88_v37 = vsel %vm84_vm2, %v81_v33, %v75_v27  ;;  %v86_v38 = vsel %vm84_vm2, %v77_v34, %v79_v26  ;;  %v87_v39 = vsel %vm84_vm2, %v75_v27, %v77_v34  ;;  %v2473_v26 = vld [vmem:[%s3532_s1 + $0x28] sm:$0xff]   ;;  %s2584_s1 = smov 2  }
  0x94   :  { %v105_v40 = vmul.f32 %v92_v29, %v88_v37  ;;  %v108_v41 = vmul.f32 %v104_v30, %v85_v36  ;;  %v106_v42 = vmul.f32 %v96_v31, %v87_v39  ;;  %v107_v43 = vmul.f32 %v100_v32, %v86_v38 }
  0x96   :  { %v146_v44 = vpack.c.bf16 %v105_v40, %v105_v40  ;;  %v149_v45 = vpack.c.bf16 %v108_v41, %v108_v41  ;;  %v147_v46 = vpack.c.bf16 %v106_v42, %v106_v42  ;;  %v148_v47 = vpack.c.bf16 %v107_v43, %v107_v43  ;;  %v112_v48 = vpop.permute.xlu1 %111  ;;  %v110_v49 = vpop.permute.xlu0 %109 }
  0x97   :  { %v120_v50 = vsel %vm117_vm3, %v110_v49, %v112_v48 }
  0x98   :  { %2351 = vmatprep.subr.msk.bf16.mxu0 %vm176_vm0, %v147_v46  ;;  %2354 = vmatprep.subr.msk.bf16.mxu1 %vm176_vm0, %v149_v45  ;;  %v312_v53 = vsel %vm176_vm0, %v146_v44, 0  ;;  %v318_v54 = vsel %vm176_vm0, %v148_v47, 0  ;;  %v138_v55 = vmul.f32 %v125_v35, %v120_v50 }
  0x99   :  { %338 = vmatpush1.bf16.msra.mxu0 %v312_v53  ;;  %391 = vmatpush1.bf16.msra.mxu1 %v318_v54 }
  0x9a   :  { %v434_v58 = vpack.c.bf16 %v138_v55, %v138_v55  ;;  %v116_v59 = vpop.permute.xlu1 %115  ;;  %v114_v60 = vpop.permute.xlu0 %113 }
  0x9b   :  { %v121_v61 = vsel %vm117_vm3, %v116_v59, %v110_v49  ;;  %v118_v62 = vsel %vm117_vm3, %v114_v60, %v116_v59  ;;  %v119_v63 = vsel %vm117_vm3, %v112_v48, %v114_v60 }
  0x9c   :  { %2352 = vmatmul.mubr.msk.bf16.vlgmr.msra.gmra.mxu0 %vm169_vm1, %v2470_v56  ;;  %2355 = vmatmul.mubr.msk.bf16.vlgmr.msra.gmra.mxu1 %vm169_vm1, %v2470_v56  ;;  %v141_v1 = vmul.f32 %v137_v51, %v121_v61  ;;  %v139_v2 = vmul.f32 %v129_v52, %v119_v63  ;;  %v140_v3 = vmul.f32 %v133_v57, %v118_v62  ;;  %v455_v11 = vsel %vm176_vm0, %v434_v58, 0 }
  0x9d   :  { %365 = vmatprep.mubr.bf16.mxu0 %v3542_v0  ;;  %418 = vmatprep.mubr.bf16.mxu1 %v3542_v0 }
  0x9e   :  { %v437_v4 = vpack.c.bf16 %v141_v1, %v141_v1  ;;  %v435_v5 = vpack.c.bf16 %v139_v2, %v139_v2  ;;  %v436_v6 = vpack.c.bf16 %v140_v3, %v140_v3 }
  0xa0   :  { %2363 = vmatprep.subr.msk.bf16.mxu0 %vm176_vm0, %v435_v5  ;;  %2366 = vmatprep.subr.msk.bf16.mxu1 %vm176_vm0, %v437_v4  ;;  %v461_v18 = vsel %vm176_vm0, %v436_v6, 0 }
  0xa1   :  { %481 = vmatpush1.bf16.msra.mxu0 %v455_v11  ;;  %534 = vmatpush1.bf16.msra.mxu1 %v461_v18 }
  0xa4   :  { %2353 = vmatmul.mubr.msk.bf16.gmra.mxu0 %vm169_vm1, %v2471_v12  ;;  %2356 = vmatmul.mubr.msk.bf16.gmra.mxu1 %vm169_vm1, %v2471_v12 }
  0xa5   :  { %498 = vmatprep.mubr.bf16.mxu0 %v3542_v0  ;;  %551 = vmatprep.mubr.bf16.mxu1 %v3542_v0 }
  0xa7   :  { %v2789_v45 = vpop.permute.xlu1 %605  ;;  %v2791_v50 = vpop.permute.xlu0 %600 }
  0xac   :  { %2364 = vmatmul.mubr.msk.bf16.vlgmr.msra.gmra.mxu0 %vm169_vm1, %v2472_v22  ;;  %2367 = vmatmul.mubr.msk.bf16.vlgmr.msra.gmra.mxu1 %vm169_vm1, %v2472_v22  ;;  %v2793_v53 = vpop.permute.xlu1 %633  ;;  %v2795_v58 = vpop.permute.xlu0 %637 }
  0xad   :  { %508 = vmatprep.mubr.bf16.mxu0 %v3542_v0  ;;  %561 = vmatprep.mubr.bf16.mxu1 %v3542_v0 }
  0xb0   :  { %v626_v5 = vpop.permute.xlu0 %625 }
  0xb1   :  { %v591_v61 = vpop.permute.xlu1 %590 }
  0xb4   :  { %2365 = vmatmul.mubr.msk.bf16.gmra.mxu0 %vm169_vm1, %v2473_v26  ;;  %2368 = vmatmul.mubr.msk.bf16.gmra.mxu1 %vm169_vm1, %v2473_v26 }
  0xb5   :  { %924 = vmatprep.mubr.bf16.mxu0 %v3542_v0  ;;  %977 = vmatprep.mubr.bf16.mxu1 %v3542_v0  ;;  %v596_v26 = vpop.permute.xlu1 %595 }
  0xe2   :  { %v223_v27 = vpop.f32.mrf.mxu0  ;;  %v276_v28 = vpop.f32.mrf.mxu1 }
  0xe4   :  { %v225_v29 = vpop.f32.mrf.mxu0  ;;  %v278_v30 = vpop.f32.mrf.mxu1 }
  0xe6   :  { %v227_v31 = vpop.f32.mrf.mxu0  ;;  %v280_v32 = vpop.f32.mrf.mxu1 }
  0xe8   :  { %v229_v33 = vpop.f32.mrf.mxu0  ;;  %v282_v34 = vpop.f32.mrf.mxu1 }
  0xea   :  { %v233_v35 = vpop.f32.mrf.mxu0  ;;  %v286_v36 = vpop.f32.mrf.mxu1 }
  0xec   :  { %v235_v37 = vpop.f32.mrf.mxu0  ;;  %v288_v38 = vpop.f32.mrf.mxu1 }
  0xee   :  { %v2783_v39 = vpop.f32.mrf.mxu0  ;;  %v290_v40 = vpop.f32.mrf.mxu1 }
  0xf0   :  { %v2785_v41 = vpop.f32.mrf.mxu0  ;;  %v2787_v42 = vpop.f32.mrf.mxu1 }
 0x15c   :  { %v357_v43 = vpop.f32.mrf.mxu0  ;;  %v410_v44 = vpop.f32.mrf.mxu1 }
 0x15d   :  { %v358_v1 = vadd.f32 %v357_v43, %v223_v27  ;;  %v411_v6 = vadd.f32 %v410_v44, %v276_v28 }
 0x15e   :  { %v359_v46 = vpop.f32.mrf.mxu0  ;;  %v412_v47 = vpop.f32.mrf.mxu1 }
 0x15f   :  { %v360_v15 = vadd.f32 %v359_v46, %v225_v29  ;;  %v413_v0 = vadd.f32 %v412_v47, %v278_v30 }
 0x160   :  { %v361_v48 = vpop.f32.mrf.mxu0  ;;  %v414_v49 = vpop.f32.mrf.mxu1 }
 0x161   :  { %v415_v18 = vadd.f32 %v414_v49, %v280_v32  ;;  %v362_v10 = vadd.f32 %v361_v48, %v227_v31 }
 0x162   :  { %v363_v51 = vpop.f32.mrf.mxu0  ;;  %v416_v52 = vpop.f32.mrf.mxu1 }
 0x163   :  { %v364_v23 = vadd.f32 %v363_v51, %v229_v33  ;;  %v417_v27 = vadd.f32 %v416_v52, %v282_v34 }
 0x164   :  { %v367_v54 = vpop.f32.mrf.mxu0  ;;  %v420_v55 = vpop.f32.mrf.mxu1 }
 0x165   :  { %v368_v44 = vadd.f32 %v367_v54, %v233_v35  ;;  %v421_v20 = vadd.f32 %v420_v55, %v286_v36 }
 0x166   :  { %v369_v56 = vpop.f32.mrf.mxu0  ;;  %v422_v57 = vpop.f32.mrf.mxu1 }
 0x167   :  { %v370_v32 = vadd.f32 %v369_v56, %v235_v37  ;;  %v423_v49 = vadd.f32 %v422_v57, %v288_v38 }
 0x168   :  { %v424_v59 = vpop.f32.mrf.mxu1  ;;  %v371_v60 = vpop.f32.mrf.mxu0 }
 0x169   :  { %v425_v33 = vadd.f32 %v424_v59, %v290_v40 }
 0x16a   :  { %v373_v62 = vpop.f32.mrf.mxu0  ;;  %v426_v63 = vpop.f32.mrf.mxu1 }
 0x16c   :  { %v553_v2 = vpop.f32.mrf.mxu1  ;;  %v500_v3 = vpop.f32.mrf.mxu0 }
 0x16d   :  { %v572_v4 = vadd.f32 %v500_v3, %v358_v1  ;;  %v574_v9 = vadd.f32 %v553_v2, %v411_v6 }
 0x16e   :  { %v502_v11 = vpop.f32.mrf.mxu0  ;;  %v555_v12 = vpop.f32.mrf.mxu1 }
 0x16f   :  { %v608_v22 = vmul.f32 %v591_v61, %v572_v4  ;;  %v573_v43 = vadd.f32 %v502_v11, %v360_v15  ;;  %v575_v24 = vadd.f32 %v555_v12, %v413_v0  ;;  %v630_v4 = vpop.permute.xlu1 %629  ;;  %v610_v29 = vmul.f32 %v591_v61, %v574_v9 }
 0x170   :  { %v557_v8 = vpop.f32.mrf.mxu1  ;;  %v504_v7 = vpop.f32.mrf.mxu0  ;;  %v372_v0 = vadd.f32 %v371_v60, %v2783_v39 }
 0x171   :  { %v578_v21 = vadd.f32 %v557_v8, %v415_v18  ;;  %v640_v25 = vadd.f32 %v626_v5, %v608_v22  ;;  %v576_v1 = vadd.f32 %v504_v7, %v362_v10  ;;  %v374_v7 = vadd.f32 %v373_v62, %v2785_v41 }
 0x172   :  { %v506_v3 = vpop.f32.mrf.mxu0  ;;  %v559_v28 = vpop.f32.mrf.mxu1  ;;  %v609_v10 = vmul.f32 %v591_v61, %v573_v43  ;;  %v611_v15 = vmul.f32 %v591_v61, %v575_v24  ;;  %v642_v52 = vadd.f32 %v626_v5, %v610_v29 }
 0x173   :  { %v614_v30 = vmul.f32 %v596_v26, %v578_v21  ;;  %v612_v31 = vmul.f32 %v596_v26, %v576_v1  ;;  %v577_v46 = vadd.f32 %v506_v3, %v364_v23  ;;  %v656_v8 = vmul.f32 0.2, %v640_v25 }
 0x174   :  { %v510_v47 = vpop.f32.mrf.mxu0  ;;  %v563_v48 = vpop.f32.mrf.mxu1  ;;  %v579_v51 = vadd.f32 %v559_v28, %v417_v27  ;;  %v427_v23 = vadd.f32 %v426_v63, %v2787_v42  ;;  %v641_v24 = vadd.f32 %v626_v5, %v609_v10  ;;  %v2804_v60 = vadd.f32 %v626_v5, %v611_v15 }
 0x175   :  { %v580_v34 = vadd.f32 %v510_v47, %v368_v44  ;;  %v644_v37 = vadd.f32 %v630_v4, %v612_v31  ;;  %v582_v38 = vadd.f32 %v563_v48, %v421_v20  ;;  %v613_v54 = vmul.f32 %v596_v26, %v577_v46 }
 0x176   :  { %v512_v35 = vpop.f32.mrf.mxu0  ;;  %v565_v36 = vpop.f32.mrf.mxu1  ;;  %v646_v40 = vadd.f32 %v630_v4, %v614_v30  ;;  %v615_v57 = vmul.f32 %v596_v26, %v579_v51  ;;  %v2802_v59 = vmax.f32 %v640_v25, %v656_v8  ;;  %v658_v25 = vmul.f32 0.2, %v642_v52 }
 0x177   :  { %v581_v9 = vadd.f32 %v512_v35, %v370_v32  ;;  %v583_v21 = vadd.f32 %v565_v36, %v423_v49  ;;  %v616_v39 = vmul.f32 %v2791_v50, %v580_v34  ;;  %v660_v42 = vmul.f32 0.2, %v644_v37 }
 0x178   :  { %v514_v55 = vpop.f32.mrf.mxu0  ;;  %v567_v56 = vpop.f32.mrf.mxu1  ;;  %v618_v63 = vmul.f32 %v2791_v50, %v582_v38  ;;  %688 = vrot.lane.b32.xlu0 %v2802_v59, %s2584_s1  ;;  %v662_v12 = vmul.f32 0.2, %v646_v40  ;;  %v645_v22 = vadd.f32 %v630_v4, %v613_v54  ;;  %v647_v26 = vadd.f32 %v630_v4, %v615_v57 }
 0x179   :  { %v617_v41 = vmul.f32 %v2791_v50, %v581_v9  ;;  %v619_v20 = vmul.f32 %v2791_v50, %v583_v21  ;;  %v584_v61 = vadd.f32 %v514_v55, %v372_v0  ;;  %v586_v6 = vadd.f32 %v567_v56, %v425_v33 }
 0x17a   :  { %v516_v62 = vpop.f32.mrf.mxu0  ;;  %v569_v11 = vpop.f32.mrf.mxu1  ;;  %v648_v27 = vadd.f32 %v2793_v53, %v616_v39  ;;  %v650_v44 = vadd.f32 %v2793_v53, %v618_v63  ;;  %v2819_v29 = vmax.f32 %v644_v37, %v660_v42  ;;  %v2823_v46 = vmax.f32 %v642_v52, %v658_v25  ;;  %v2475_v63 = vld [vmem:[%s3533_s2 + $0x18] sm:$0xff]  }
 0x17b   :  { %v649_v2 = vadd.f32 %v2793_v53, %v617_v41  ;;  %v620_v5 = vmul.f32 %v2789_v45, %v584_v61  ;;  %v585_v18 = vadd.f32 %v516_v62, %v374_v7  ;;  %v622_v43 = vmul.f32 %v2789_v45, %v586_v6  ;;  %v2474_v62 = vld [vmem:[%s3533_s2 + $0x10] sm:$0xff]  }
 0x17c   :  { %v651_v50 = vadd.f32 %v2793_v53, %v619_v20  ;;  %v587_v28 = vadd.f32 %v569_v11, %v427_v23  ;;  %v661_v47 = vmul.f32 0.2, %v645_v22  ;;  %v664_v48 = vmul.f32 0.2, %v648_v27  ;;  %690 = vrot.lane.b32.xlu1 %v2819_v29, %s2584_s1  ;;  %704 = vrot.lane.b32.xlu0 %v2823_v46, %s2584_s1 }
 0x17d   :  { %v652_v1 = vadd.f32 %v2795_v58, %v620_v5  ;;  %v621_v3 = vmul.f32 %v2789_v45, %v585_v18  ;;  %v665_v32 = vmul.f32 0.2, %v649_v2  ;;  %v654_v49 = vadd.f32 %v2795_v58, %v622_v43 }
 0x17e   :  { %v623_v31 = vmul.f32 %v2789_v45, %v587_v28  ;;  %v663_v8 = vmul.f32 0.2, %v647_v26  ;;  %v667_v53 = vmul.f32 0.2, %v651_v50  ;;  %v657_v0 = vmul.f32 0.2, %v641_v24 }
 0x17f   :  { %v668_v30 = vmul.f32 0.2, %v652_v1  ;;  %v653_v4 = vadd.f32 %v2795_v58, %v621_v3  ;;  %v670_v33 = vmul.f32 0.2, %v654_v49  ;;  %v666_v7 = vmul.f32 0.2, %v650_v44 }
 0x180   :  { %v655_v34 = vadd.f32 %v2795_v58, %v623_v31  ;;  %v2832_v45 = vmax.f32 %v646_v40, %v662_v12  ;;  %v659_v15 = vmul.f32 0.2, %v2804_v60  ;;  %v2835_v35 = vmax.f32 %v649_v2, %v665_v32  ;;  %769 = vrot.lane.b32.xlu0 %v2802_v59, %s2585_s18  ;;  %v3599_v31 = vld [vmem:[#allocation19_spill] sm:$0xff] }
 0x181   :  { %v669_v51 = vmul.f32 0.2, %v653_v4  ;;  %v2830_v10 = vmax.f32 %v652_v1, %v668_v30  ;;  %v2839_v38 = vmax.f32 %v648_v27, %v664_v48  ;;  %v2841_v9 = vmax.f32 %v654_v49, %v670_v33  ;;  %v3598_v30 = vld [vmem:[#allocation16_spill] sm:$0xff] }
 0x182   :  { %v671_v37 = vmul.f32 0.2, %v655_v34  ;;  %706 = vrot.lane.b32.xlu1 %v2832_v45, %s2584_s1  ;;  %v2845_v58 = vmax.f32 %v645_v22, %v661_v47  ;;  %v2847_v21 = vmax.f32 %v647_v26, %v663_v8  ;;  %v2849_v23 = vmax.f32 %v651_v50, %v667_v53  ;;  %v3600_v48 = vld [vmem:[#allocation20_spill] sm:$0xff] }
 0x183   :  { %v2837_v36 = vmax.f32 %v653_v4, %v669_v51  ;;  %3589 = vst [vmem:[#allocation21_spill] sm:$0xff] %v2839_v38  ;;  %3590 = vst [vmem:[#allocation22_spill] sm:$0xff] %v2841_v9  ;;  %v2857_v40 = vmax.f32 %v650_v44, %v666_v7  ;;  %v2859_v55 = vmax.f32 %v641_v24, %v657_v0  ;;  %v3597_v42 = vmov 0   ;;  %v3602_v7 = vld [vmem:[#allocation18_spill] sm:$0xff] }
 0x184   :  { %3591 = vst [vmem:[#allocation23_spill] sm:$0xff] %v2847_v21  ;;  %3592 = vst [vmem:[#allocation24_spill] sm:$0xff] %v2849_v23  ;;  %v2851_v52 = vmax.f32 %v655_v34, %v671_v37  ;;  %v871_v56 = vpack.c.bf16 %v2830_v10, %v2839_v38  ;;  %v2866_v39 = vmax.f32 %v2804_v60, %v659_v15  ;;  %v2586_v2 = vmov 2   ;;  %v3601_v34 = vld [vmem:[#allocation17_spill] sm:$0xff] }
 0x185   :  { %v872_v54 = vpack.c.bf16 %v2837_v36, %v2835_v35  ;;  %3594 = vst [vmem:[#allocation26_spill] sm:$0xff] %v2857_v40  ;;  %3595 = vst [vmem:[#allocation27_spill] sm:$0xff] %v2859_v55  ;;  %v873_v41 = vpack.c.bf16 %v2841_v9, %v2857_v40  ;;  %v868_v24 = vpack.c.bf16 %v2845_v58, %v2859_v55  ;;  %696 = vrot.lane.b32.xlu0 %v2859_v55, %s2584_s1  ;;  %v2587_v6 = vmov 3  }
 0x186   :  { %3593 = vst [vmem:[#allocation25_spill] sm:$0xff] %v2851_v52  ;;  %v874_v57 = vpack.c.bf16 %v2851_v52, %v2849_v23  ;;  %3596 = vst [vmem:[#allocation28_spill] sm:$0xff] %v2866_v39  ;;  %771 = vrot.lane.b32.xlu1 %v2819_v29, %s2585_s18  ;;  %v870_v20 = vpack.c.bf16 %v2847_v21, %v2866_v39  ;;  %v867_v60 = vpack.c.bf16 %v2819_v29, %v2802_v59 }
 0x187   :  { %904 = vmatprep.subr.bf16.mxu0 %v872_v54  ;;  %v869_v61 = vpack.c.bf16 %v2832_v45, %v2823_v46  ;;  %2453 = vset.pattern.permute.xlu1 %v2586_v2  ;;  %v739_v44 = vsub.s32 2, %v2715_v19  ;;  %vm720_vm5 = vcmp.lt.s32.totalorder %v3598_v30, 2  ;;  %vm801_vm6 = vcmp.lt.s32.totalorder %v3598_v30, 126 }
 0x188   :  { %905 = vmatpush1.bf16.msra.mxu0 %v871_v56  ;;  %957 = vmatprep.subr.bf16.mxu1 %v874_v57 }
 0x189   :  { %958 = vmatpush1.bf16.msra.mxu1 %v873_v41  ;;  %906 = vmatprep.subr.bf16.mxu0 %v868_v24  ;;  %v744_v47 = vrot.slane %v3599_v31, %v739_v44  ;;  %v748_v33 = vrot.slane %v3600_v48, %v739_v44  ;;  %v740_v0 = vrot.slane %v3601_v34, %v739_v44 }
 0x18a   :  { %959 = vmatprep.subr.bf16.mxu1 %v870_v20  ;;  %698 = vrot.lane.b32.xlu1 %v2845_v58, %s2584_s1  ;;  %v752_v15 = vrot.slane %v3602_v7, %v739_v44 }
 0x18b   :  { %712 = vrot.lane.b32.xlu0 %v2866_v39, %s2584_s1 }
 0x18c   :  { %907 = vmatpush1.bf16.msra.mxu0 %v867_v60  ;;  %2452 = vset.pattern.permute.xlu0 %v2586_v2 }
 0x18d   :  { %960 = vmatpush1.bf16.msra.mxu1 %v869_v61 }
 0x18e   :  { %714 = vrot.lane.b32.xlu1 %v2847_v21, %s2584_s1 }
 0x18f   :  { %692 = vrot.lane.b32.xlu0 %v2839_v38, %s2584_s1  ;;  %2375 = vmatmul.mubr.msk.bf16.vlgmr.msra.gmra.mxu0 %vm885_vm4, %v2474_v62 }
 0x190   :  { %2377 = vmatmul.mubr.msk.bf16.vlgmr.msra.gmra.mxu1 %vm885_vm4, %v2474_v62  ;;  %934 = vmatprep.mubr.bf16.mxu0 %v3597_v42 }
 0x191   :  { %987 = vmatprep.mubr.bf16.mxu1 %v3597_v42 }
 0x192   :  { %694 = vrot.lane.b32.xlu1 %v2830_v10, %s2584_s1 }
 0x193   :  { %708 = vrot.lane.b32.xlu0 %v2857_v40, %s2584_s1 }
 0x196   :  { %710 = vrot.lane.b32.xlu1 %v2841_v9, %s2584_s1 }
 0x197   :  { %773 = vrot.lane.b32.xlu0 %v2839_v38, %s2585_s18  ;;  %2376 = vmatmul.mubr.msk.bf16.gmra.mxu0 %vm885_vm4, %v2475_v63 }
 0x198   :  { %2378 = vmatmul.mubr.msk.bf16.gmra.mxu1 %vm885_vm4, %v2475_v63  ;;  %1046 = vmatprep.mubr.bf16.mxu0 %v3597_v42 }
 0x199   :  { %1099 = vmatprep.mubr.bf16.mxu1 %v3597_v42 }
 0x19a   :  { %775 = vrot.lane.b32.xlu1 %v2830_v10, %s2585_s18 }
 0x19b   :  { %789 = vrot.lane.b32.xlu0 %v2857_v40, %s2585_s18 }
 0x19e   :  { %791 = vrot.lane.b32.xlu1 %v2841_v9, %s2585_s18 }
 0x19f   :  { %700 = vrot.lane.b32.xlu0 %v2835_v35, %s2584_s1 }
 0x1a2   :  { %702 = vrot.lane.b32.xlu1 %v2837_v36, %s2584_s1 }
 0x1a3   :  { %716 = vrot.lane.b32.xlu0 %v2849_v23, %s2584_s1 }
 0x1a6   :  { %718 = vrot.lane.b32.xlu1 %v2851_v52, %s2584_s1 }
 0x1a7   :  { %777 = vrot.lane.b32.xlu0 %v2859_v55, %s2585_s18 }
 0x1aa   :  { %779 = vrot.lane.b32.xlu1 %v2845_v58, %s2585_s18 }
 0x1ab   :  { %781 = vrot.lane.b32.xlu0 %v2835_v35, %s2585_s18 }
 0x1ae   :  { %787 = vrot.lane.b32.xlu1 %v2832_v45, %s2585_s18 }
 0x1af   :  { %797 = vrot.lane.b32.xlu0 %v2849_v23, %s2585_s18 }
 0x1b2   :  { %783 = vrot.lane.b32.xlu1 %v2837_v36, %s2585_s18 }
 0x1b3   :  { %785 = vrot.lane.b32.xlu0 %v2823_v46, %s2585_s18 }
 0x1b6   :  { %799 = vrot.lane.b32.xlu1 %v2851_v52, %s2585_s18 }
 0x1b7   :  { %793 = vrot.lane.b32.xlu0 %v2866_v39, %s2585_s18 }
 0x1ba   :  { %795 = vrot.lane.b32.xlu1 %v2847_v21, %s2585_s18 }
 0x1bb   :  { %1280 = vperm.xlu0 %2452, %v2691_v14  }
 0x1be   :  { %1284 = vperm.xlu1 %2453, %v2686_v13  }
 0x1bf   :  { %2455 = vset.pattern.permute.xlu0 %v2587_v6 }
 0x1c0   :  { %1316 = vperm.xlu0 %2455, %v2686_v13  }
 0x1c2   :  { %2454 = vset.pattern.permute.xlu1 %v2587_v6 }
 0x1c3   :  { %1312 = vperm.xlu1 %2454, %v2691_v14  }
 0x1c4   :  { %1304 = vperm.xlu0 %2455, %v2702_v16  }
 0x1c7   :  { %2456 = vset.pattern.permute.xlu1 %v2586_v2 }
 0x1c8   :  { %1272 = vperm.xlu1 %2456, %v2702_v16  }
 0x1cc   :  { %1276 = vperm.xlu1 %2456, %v2710_v17  }
 0x1d0   :  { %2457 = vset.pattern.permute.xlu1 %v2587_v6 }
 0x1d1   :  { %1308 = vperm.xlu1 %2457, %v2710_v17  }
 0x1ea   :  { %v689_v11 = vpop.permute.xlu0 %688 }
 0x1ee   :  { %v691_v25 = vpop.permute.xlu1 %690  ;;  %v705_v12 = vpop.permute.xlu0 %704 }
 0x1f2   :  { %v2954_v18 = vpop.permute.xlu0 %769 }
 0x1f4   :  { %v707_v5 = vpop.permute.xlu1 %706 }
 0x1f7   :  { %v697_v14 = vpop.permute.xlu0 %696 }
 0x1f8   :  { %v2956_v22 = vpop.permute.xlu1 %771  ;;  %v729_v51 = vsel %vm720_vm5, %v689_v11, %v697_v14 }
 0x1fc   :  { %v699_v13 = vpop.permute.xlu1 %698 }
 0x1fd   :  { %v713_v26 = vpop.permute.xlu0 %712  ;;  %v730_v8 = vsel %vm720_vm5, %v691_v25, %v699_v13  ;;  %v726_v20 = vsel %vm720_vm5, %v699_v13, %v707_v5 }
 0x1fe   :  { %v758_v60 = vmul.f32 %v744_v47, %v730_v8  ;;  %v721_v63 = vsel %vm720_vm5, %v705_v12, %v713_v26 }
 0x200   :  { %v715_v27 = vpop.permute.xlu1 %714 }
 0x201   :  { %v693_v43 = vpop.permute.xlu0 %692  ;;  %v722_v56 = vsel %vm720_vm5, %v707_v5, %v715_v27  ;;  %v734_v2 = vsel %vm720_vm5, %v715_v27, %v691_v25  ;;  %v725_v25 = vsel %vm720_vm5, %v697_v14, %v705_v12  ;;  %v754_v27 = vmul.f32 %v744_v47, %v729_v51 }
 0x202   :  { %v755_v14 = vmul.f32 %v748_v33, %v725_v25 }
 0x204   :  { %v695_v50 = vpop.permute.xlu1 %694 }
 0x205   :  { %v709_v16 = vpop.permute.xlu0 %708 }
 0x208   :  { %v711_v1 = vpop.permute.xlu1 %710 }
 0x209   :  { %v2958_v3 = vpop.permute.xlu0 %773 }
 0x20c   :  { %v2960_v28 = vpop.permute.xlu1 %775 }
 0x20d   :  { %v2962_v17 = vpop.permute.xlu0 %789 }
 0x210   :  { %v2965_v32 = vpop.permute.xlu1 %791 }
 0x211   :  { %v701_v49 = vpop.permute.xlu0 %700 }
 0x212   :  { %v731_v4 = vsel %vm720_vm5, %v693_v43, %v701_v49  ;;  %v727_v6 = vsel %vm720_vm5, %v701_v49, %v709_v16 }
 0x213   :  { %v762_v57 = vmul.f32 %v744_v47, %v731_v4  ;;  %v763_v49 = vmul.f32 %v748_v33, %v727_v6 }
 0x214   :  { %v703_v53 = vpop.permute.xlu1 %702 }
 0x215   :  { %v732_v37 = vsel %vm720_vm5, %v695_v50, %v703_v53  ;;  %v717_v54 = vpop.permute.xlu0 %716  ;;  %v728_v41 = vsel %vm720_vm5, %v703_v53, %v711_v1  ;;  %v760_v53 = vmul.f32 %v752_v15, %v722_v56  ;;  %v756_v56 = vmul.f32 %v752_v15, %v721_v63 }
 0x216   :  { %v766_v24 = vmul.f32 %v744_v47, %v732_v37  ;;  %v723_v61 = vsel %vm720_vm5, %v709_v16, %v717_v54  ;;  %v735_v62 = vsel %vm720_vm5, %v717_v54, %v693_v43  ;;  %v767_v5 = vmul.f32 %v748_v33, %v728_v41 }
 0x217   :  { %v761_v37 = vmul.f32 %v740_v0, %v735_v62  ;;  %v764_v54 = vmul.f32 %v752_v15, %v723_v61  ;;  %v733_v16 = vsel %vm720_vm5, %v713_v26, %v689_v11  ;;  %v855_v61 = vpack.c.bf16 %v758_v60, %v754_v27 }
 0x218   :  { %v719_v44 = vpop.permute.xlu1 %718  ;;  %v859_v4 = vpack.c.bf16 %v766_v24, %v762_v57  ;;  %v757_v57 = vmul.f32 %v740_v0, %v734_v2  ;;  %v857_v12 = vpack.c.bf16 %v760_v53, %v756_v56 }
 0x219   :  { %v724_v13 = vsel %vm720_vm5, %v711_v1, %v719_v44  ;;  %v736_v8 = vsel %vm720_vm5, %v719_v44, %v695_v50  ;;  %v778_v43 = vpop.permute.xlu0 %777  ;;  %v759_v50 = vmul.f32 %v748_v33, %v726_v20  ;;  %v860_v44 = vpack.c.bf16 %v767_v5, %v763_v49  ;;  %v2476_v33 = vld [vmem:[%s3533_s2] sm:$0xff]  }
 0x21a   :  { %v765_v39 = vmul.f32 %v740_v0, %v736_v8  ;;  %v768_v40 = vmul.f32 %v752_v15, %v724_v13  ;;  %1026 = vmatprep.subr.bf16.mxu0 %v859_v4  ;;  %v753_v8 = vmul.f32 %v740_v0, %v733_v16  ;;  %v820_v4 = vsub.s32 3, %v2715_v19 }
 0x21c   :  { %v858_v1 = vpack.c.bf16 %v765_v39, %v761_v37  ;;  %v780_v41 = vpop.permute.xlu1 %779  ;;  %v861_v24 = vpack.c.bf16 %v768_v40, %v764_v54  ;;  %v854_v11 = vpack.c.bf16 %v757_v57, %v753_v8  ;;  %v825_v39 = vrot.slane %v3599_v31, %v820_v4 }
 0x21d   :  { %v782_v62 = vpop.permute.xlu0 %781  ;;  %v856_v40 = vpack.c.bf16 %v759_v50, %v755_v14  ;;  %v821_v15 = vrot.slane %v3601_v34, %v820_v4  ;;  %v829_v31 = vrot.slane %v3600_v48, %v820_v4  ;;  %v833_v20 = vrot.slane %v3602_v7, %v820_v4 }
 0x21e   :  { %1027 = vmatpush1.bf16.msra.mxu0 %v858_v1  ;;  %1079 = vmatprep.subr.bf16.mxu1 %v861_v24  ;;  %v808_v47 = vsel %vm801_vm6, %v782_v62, %v2962_v17  ;;  %v812_v51 = vsel %vm801_vm6, %v2958_v3, %v782_v62  ;;  %v811_v60 = vsel %vm801_vm6, %v2956_v22, %v780_v41 }
 0x21f   :  { %1028 = vmatprep.subr.bf16.mxu0 %v855_v61  ;;  %1080 = vmatpush1.bf16.msra.mxu1 %v860_v44  ;;  %v842_v63 = vmul.f32 %v821_v15, %v812_v51  ;;  %v843_v2 = vmul.f32 %v825_v39, %v808_v47  ;;  %v838_v27 = vmul.f32 %v821_v15, %v811_v60 }
 0x220   :  { %v788_v26 = vpop.permute.xlu1 %787  ;;  %1081 = vmatprep.subr.bf16.mxu1 %v857_v12 }
 0x221   :  { %v798_v0 = vpop.permute.xlu0 %797  ;;  %v807_v6 = vsel %vm801_vm6, %v780_v41, %v788_v26 }
 0x222   :  { %1029 = vmatpush1.bf16.msra.mxu0 %v854_v11  ;;  %v804_v34 = vsel %vm801_vm6, %v2962_v17, %v798_v0  ;;  %v816_v48 = vsel %vm801_vm6, %v798_v0, %v2958_v3  ;;  %v810_v3 = vsel %vm801_vm6, %v2954_v18, %v778_v43  ;;  %v839_v16 = vmul.f32 %v825_v39, %v807_v6 }
 0x223   :  { %1082 = vmatpush1.bf16.msra.mxu1 %v856_v40  ;;  %v844_v1 = vmul.f32 %v829_v31, %v804_v34  ;;  %v845_v41 = vmul.f32 %v833_v20, %v816_v48  ;;  %v834_v12 = vmul.f32 %v821_v15, %v810_v3 }
 0x224   :  { %v784_v53 = vpop.permute.xlu1 %783 }
 0x225   :  { %v809_v7 = vsel %vm801_vm6, %v784_v53, %v2965_v32  ;;  %v813_v5 = vsel %vm801_vm6, %v2960_v28, %v784_v53  ;;  %v786_v13 = vpop.permute.xlu0 %785  ;;  %2381 = vmatmul.mubr.msk.bf16.vlgmr.msra.gmra.mxu0 %vm885_vm4, %v2476_v33 }
 0x226   :  { %v846_v37 = vmul.f32 %v821_v15, %v813_v5  ;;  %v847_v54 = vmul.f32 %v825_v39, %v809_v7  ;;  %v806_v17 = vsel %vm801_vm6, %v778_v43, %v786_v13  ;;  %2383 = vmatmul.mubr.msk.bf16.vlgmr.msra.gmra.mxu1 %vm885_vm4, %v2476_v33  ;;  %1056 = vmatprep.mubr.bf16.mxu0 %v3597_v42  ;;  %v2477_v43 = vld [vmem:[%s3533_s2 + $0x8] sm:$0xff]  }
 0x227   :  { %v835_v25 = vmul.f32 %v825_v39, %v806_v17  ;;  %1109 = vmatprep.mubr.bf16.mxu1 %v3597_v42  ;;  %v1125_v39 = vpack.c.bf16 %v838_v27, %v834_v12 }
 0x228   :  { %v1129_v49 = vpack.c.bf16 %v846_v37, %v842_v63  ;;  %v800_v56 = vpop.permute.xlu1 %799  ;;  %v1130_v57 = vpack.c.bf16 %v847_v54, %v843_v2 }
 0x229   :  { %v805_v24 = vsel %vm801_vm6, %v2965_v32, %v800_v56  ;;  %v817_v50 = vsel %vm801_vm6, %v800_v56, %v2960_v28  ;;  %v794_v44 = vpop.permute.xlu0 %793  ;;  %v1126_v4 = vpack.c.bf16 %v839_v16, %v835_v25 }
 0x22a   :  { %v848_v62 = vmul.f32 %v829_v31, %v805_v24  ;;  %v849_v61 = vmul.f32 %v833_v20, %v817_v50  ;;  %v802_v8 = vsel %vm801_vm6, %v786_v13, %v794_v44  ;;  %1161 = vmatprep.subr.bf16.mxu0 %v1130_v57  ;;  %v814_v32 = vsel %vm801_vm6, %v794_v44, %v2954_v18 }
 0x22b   :  { %1162 = vmatpush1.bf16.msra.mxu0 %v1129_v49  ;;  %v836_v40 = vmul.f32 %v829_v31, %v802_v8  ;;  %v837_v0 = vmul.f32 %v833_v20, %v814_v32 }
 0x22c   :  { %v1131_v14 = vpack.c.bf16 %v848_v62, %v844_v1  ;;  %v796_v28 = vpop.permute.xlu1 %795  ;;  %1163 = vmatprep.subr.bf16.mxu0 %v1126_v4  ;;  %v1132_v11 = vpack.c.bf16 %v849_v61, %v845_v41 }
 0x22d   :  { %v803_v47 = vsel %vm801_vm6, %v788_v26, %v796_v28  ;;  %v815_v51 = vsel %vm801_vm6, %v796_v28, %v2956_v22  ;;  %2382 = vmatmul.mubr.msk.bf16.gmra.mxu0 %vm885_vm4, %v2477_v43  ;;  %v2478_v22 = vld [vmem:[%s3533_s2 + $0x20] sm:$0xff]   ;;  %v2479_v26 = vld [vmem:[%s3533_s2 + $0x28] sm:$0xff]   ;;  %s2588_s2 = smov 4  }
 0x22e   :  { %v840_v33 = vmul.f32 %v829_v31, %v803_v47  ;;  %v841_v15 = vmul.f32 %v833_v20, %v815_v51  ;;  %2384 = vmatmul.mubr.msk.bf16.gmra.mxu1 %vm885_vm4, %v2477_v43  ;;  %1214 = vmatprep.subr.bf16.mxu1 %v1132_v11 }
 0x22f   :  { %1164 = vmatpush1.bf16.msra.mxu0 %v1125_v39  ;;  %1215 = vmatpush1.bf16.msra.mxu1 %v1131_v14 }
 0x230   :  { %v1127_v18 = vpack.c.bf16 %v840_v33, %v836_v40  ;;  %v1128_v60 = vpack.c.bf16 %v841_v15, %v837_v0  ;;  %1181 = vmatprep.mubr.bf16.mxu0 %v3597_v42  ;;  %1234 = vmatprep.mubr.bf16.mxu1 %v3597_v42 }
 0x232   :  { %1216 = vmatprep.subr.bf16.mxu1 %v1128_v60 }
 0x233   :  { %1217 = vmatpush1.bf16.msra.mxu1 %v1127_v18 }
 0x235   :  { %2391 = vmatmul.mubr.msk.bf16.vlgmr.msra.gmra.mxu0 %vm885_vm4, %v2478_v22 }
 0x236   :  { %2393 = vmatmul.mubr.msk.bf16.vlgmr.msra.gmra.mxu1 %vm885_vm4, %v2478_v22  ;;  %1191 = vmatprep.mubr.bf16.mxu0 %v3597_v42  ;;  %v3094_v50 = vpop.permute.xlu0 %1280 }
 0x237   :  { %1244 = vmatprep.mubr.bf16.mxu1 %v3597_v42 }
 0x239   :  { %v3092_v56 = vpop.permute.xlu1 %1284 }
 0x23b   :  { %v3098_v32 = vpop.permute.xlu0 %1316 }
 0x23d   :  { %2392 = vmatmul.mubr.msk.bf16.gmra.mxu0 %vm885_vm4, %v2479_v26 }
 0x23e   :  { %2394 = vmatmul.mubr.msk.bf16.gmra.mxu1 %vm885_vm4, %v2479_v26  ;;  %1618 = vmatprep.mubr.bf16.mxu0 %v3597_v42  ;;  %v3096_v62 = vpop.permute.xlu1 %1312 }
 0x23f   :  { %1671 = vmatprep.mubr.bf16.mxu1 %v3597_v42  ;;  %v1305_v22 = vpop.permute.xlu0 %1304 }
 0x243   :  { %v1273_v11 = vpop.permute.xlu1 %1272 }
 0x247   :  { %v1277_v21 = vpop.permute.xlu1 %1276 }
 0x24f   :  { %v926_v31 = vpop.f32.mrf.mxu0 }
 0x250   :  { %v979_v20 = vpop.f32.mrf.mxu1 }
 0x251   :  { %v928_v63 = vpop.f32.mrf.mxu0 }
 0x252   :  { %v981_v2 = vpop.f32.mrf.mxu1 }
 0x253   :  { %v930_v6 = vpop.f32.mrf.mxu0 }
 0x254   :  { %v983_v53 = vpop.f32.mrf.mxu1 }
 0x255   :  { %v932_v34 = vpop.f32.mrf.mxu0 }
 0x256   :  { %v985_v48 = vpop.f32.mrf.mxu1 }
 0x257   :  { %v936_v7 = vpop.f32.mrf.mxu0 }
 0x258   :  { %v989_v5 = vpop.f32.mrf.mxu1 }
 0x259   :  { %v938_v13 = vpop.f32.mrf.mxu0 }
 0x25a   :  { %v3082_v37 = vpop.f32.mrf.mxu1 }
 0x25b   :  { %v3084_v54 = vpop.f32.mrf.mxu0 }
 0x25c   :  { %v3086_v17 = vpop.f32.mrf.mxu1 }
 0x25d   :  { %v3088_v3 = vpop.f32.mrf.mxu0 }
 0x25e   :  { %v3090_v25 = vpop.f32.mrf.mxu1 }
 0x2e5   :  { %v1048_v27 = vpop.f32.mrf.mxu0 }
 0x2e6   :  { %v1101_v16 = vpop.f32.mrf.mxu1  ;;  %v1049_v39 = vadd.f32 %v1048_v27, %v926_v31 }
 0x2e7   :  { %v1050_v49 = vpop.f32.mrf.mxu0  ;;  %v1102_v47 = vadd.f32 %v1101_v16, %v979_v20 }
 0x2e8   :  { %v1103_v57 = vpop.f32.mrf.mxu1  ;;  %v1051_v15 = vadd.f32 %v1050_v49, %v928_v63 }
 0x2e9   :  { %v1052_v1 = vpop.f32.mrf.mxu0  ;;  %v1104_v26 = vadd.f32 %v1103_v57, %v981_v2  ;;  %v1309_v57 = vpop.permute.xlu1 %1308 }
 0x2ea   :  { %v1105_v41 = vpop.f32.mrf.mxu1  ;;  %v1053_v30 = vadd.f32 %v1052_v1, %v930_v6 }
 0x2eb   :  { %v1054_v24 = vpop.f32.mrf.mxu0  ;;  %v1106_v9 = vadd.f32 %v1105_v41, %v983_v53 }
 0x2ec   :  { %v1107_v44 = vpop.f32.mrf.mxu1 }
 0x2ed   :  { %v1058_v43 = vpop.f32.mrf.mxu0 }
 0x2ee   :  { %v1111_v61 = vpop.f32.mrf.mxu1 }
 0x2ef   :  { %v1060_v8 = vpop.f32.mrf.mxu0  ;;  %v1112_v2 = vadd.f32 %v1111_v61, %v989_v5 }
 0x2f0   :  { %v1113_v4 = vpop.f32.mrf.mxu1 }
 0x2f1   :  { %v1062_v12 = vpop.f32.mrf.mxu0 }
 0x2f2   :  { %v1115_v14 = vpop.f32.mrf.mxu1 }
 0x2f3   :  { %v1064_v28 = vpop.f32.mrf.mxu0 }
 0x2f4   :  { %v1117_v40 = vpop.f32.mrf.mxu1 }
 0x2f5   :  { %v1183_v51 = vpop.f32.mrf.mxu0 }
 0x2f6   :  { %v1255_v0 = vadd.f32 %v1183_v51, %v1049_v39  ;;  %v1236_v33 = vpop.f32.mrf.mxu1  ;;  %v1055_v39 = vadd.f32 %v1054_v24, %v932_v34 }
 0x2f7   :  { %v1257_v18 = vadd.f32 %v1236_v33, %v1102_v47  ;;  %v1185_v60 = vpop.f32.mrf.mxu0  ;;  %v1108_v47 = vadd.f32 %v1107_v44, %v985_v48  ;;  %v1059_v33 = vadd.f32 %v1058_v43, %v936_v7  ;;  %v1116_v48 = vadd.f32 %v1115_v14, %v3086_v17 }
 0x2f8   :  { %v1287_v19 = vmul.f32 %v1273_v11, %v1255_v0  ;;  %v1238_v42 = vpop.f32.mrf.mxu1  ;;  %v1256_v55 = vadd.f32 %v1185_v60, %v1051_v15  ;;  %v1061_v0 = vadd.f32 %v1060_v8, %v938_v13  ;;  %v1065_v13 = vadd.f32 %v1064_v28, %v3088_v3 }
 0x2f9   :  { %v1187_v52 = vpop.f32.mrf.mxu0  ;;  %v1258_v23 = vadd.f32 %v1238_v42, %v1104_v26  ;;  %v1289_v20 = vmul.f32 %v1273_v11, %v1257_v18 }
 0x2fa   :  { %v1319_v38 = vadd.f32 %v1305_v22, %v1287_v19  ;;  %v1259_v31 = vadd.f32 %v1187_v52, %v1053_v30  ;;  %v1240_v27 = vpop.f32.mrf.mxu1  ;;  %v1288_v6 = vmul.f32 %v1273_v11, %v1256_v55  ;;  %v1114_v19 = vadd.f32 %v1113_v4, %v3082_v37 }
 0x2fb   :  { %v1189_v16 = vpop.f32.mrf.mxu0  ;;  %v1261_v63 = vadd.f32 %v1240_v27, %v1106_v9  ;;  %v1290_v15 = vmul.f32 %v1273_v11, %v1258_v23  ;;  %v1063_v52 = vadd.f32 %v1062_v12, %v3084_v54  ;;  %v3102_v30 = vadd.f32 %v1305_v22, %v1289_v20 }
 0x2fc   :  { %v1291_v51 = vmul.f32 %v1277_v21, %v1259_v31  ;;  %v1242_v49 = vpop.f32.mrf.mxu1  ;;  %v1335_v60 = vmul.f32 0.2, %v1319_v38  ;;  %v1260_v53 = vadd.f32 %v1189_v16, %v1055_v39  ;;  %v1118_v23 = vadd.f32 %v1117_v40, %v3090_v25 }
 0x2fd   :  { %v1193_v1 = vpop.f32.mrf.mxu0  ;;  %v1262_v34 = vadd.f32 %v1242_v49, %v1108_v47  ;;  %v1293_v7 = vmul.f32 %v1277_v21, %v1261_v63  ;;  %v3107_v24 = vadd.f32 %v1305_v22, %v1288_v6  ;;  %v3109_v43 = vadd.f32 %v1305_v22, %v1290_v15 }
 0x2fe   :  { %v1246_v42 = vpop.f32.mrf.mxu1  ;;  %v1323_v5 = vadd.f32 %v1309_v57, %v1291_v51  ;;  %v1263_v55 = vadd.f32 %v1193_v1, %v1059_v33  ;;  %v1351_v54 = vmax.f32 %v1319_v38, %v1335_v60  ;;  %v1292_v61 = vmul.f32 %v1277_v21, %v1260_v53 }
 0x2ff   :  { %v1195_v9 = vpop.f32.mrf.mxu0  ;;  %v1265_v44 = vadd.f32 %v1246_v42, %v1112_v2  ;;  %v1337_v17 = vmul.f32 0.2, %v3102_v30  ;;  %v1294_v12 = vmul.f32 %v1277_v21, %v1262_v34  ;;  %v1325_v18 = vadd.f32 %v1309_v57, %v1293_v7 }
 0x300   :  { %v1248_v41 = vpop.f32.mrf.mxu1  ;;  %v1264_v8 = vadd.f32 %v1195_v9, %v1061_v0  ;;  %v1295_v14 = vmul.f32 %v3094_v50, %v1263_v55  ;;  %v1339_v3 = vmul.f32 0.2, %v1323_v5  ;;  %v3115_v40 = vmul.f32 0.2, %v3107_v24 }
 0x301   :  { %v1197_v37 = vpop.f32.mrf.mxu0  ;;  %v1266_v11 = vadd.f32 %v1248_v41, %v1114_v19  ;;  %v1297_v22 = vmul.f32 %v3094_v50, %v1265_v44  ;;  %v1324_v27 = vadd.f32 %v1309_v57, %v1292_v61  ;;  %v3122_v16 = vadd.f32 %v1351_v54, %v2802_v59 }
 0x302   :  { %v1250_v4 = vpop.f32.mrf.mxu1  ;;  %v1296_v25 = vmul.f32 %v3094_v50, %v1264_v8  ;;  %v1267_v28 = vadd.f32 %v1197_v37, %v1063_v52  ;;  %v1326_v51 = vadd.f32 %v1309_v57, %v1294_v12  ;;  %v1327_v63 = vadd.f32 %v3096_v62, %v1295_v14 }
 0x303   :  { %v1298_v38 = vmul.f32 %v3094_v50, %v1266_v11  ;;  %v1269_v26 = vadd.f32 %v1250_v4, %v1116_v48  ;;  %v1199_v31 = vpop.f32.mrf.mxu0  ;;  %3603 = vst [vmem:[#allocation19_spill] sm:$0xff] %v3122_v16  ;;  %v1341_v33 = vmul.f32 0.2, %v1325_v18  ;;  %v1355_v50 = vmax.f32 %v1323_v5, %v1339_v3  ;;  %1383 = vrot.lane.b32.xlu0 %v3122_v16, %s2588_s2 }
 0x304   :  { %v1328_v21 = vadd.f32 %v3096_v62, %v1296_v25  ;;  %v1299_v20 = vmul.f32 %v3092_v56, %v1267_v28  ;;  %v1252_v39 = vpop.f32.mrf.mxu1  ;;  %v1268_v6 = vadd.f32 %v1199_v31, %v1065_v13  ;;  %v1353_v59 = vmax.f32 %v3102_v30, %v1337_v17 }
 0x305   :  { %v1330_v49 = vadd.f32 %v3096_v62, %v1298_v38  ;;  %v1301_v47 = vmul.f32 %v3092_v56, %v1269_v26  ;;  %v1329_v1 = vadd.f32 %v3096_v62, %v1297_v22  ;;  %v1270_v0 = vadd.f32 %v1252_v39, %v1118_v23  ;;  %v3609_v22 = vld [vmem:[#allocation22_spill] sm:$0xff] }
 0x306   :  { %v1331_v2 = vadd.f32 %v3098_v32, %v1299_v20  ;;  %v1340_v15 = vmul.f32 0.2, %v1324_v27  ;;  %v1344_v60 = vmul.f32 0.2, %v1328_v21  ;;  %v1300_v42 = vmul.f32 %v3092_v56, %v1268_v6 }
 0x307   :  { %v1333_v57 = vadd.f32 %v3098_v32, %v1301_v47  ;;  %v1343_v19 = vmul.f32 0.2, %v1327_v63  ;;  %v1346_v52 = vmul.f32 0.2, %v1330_v49  ;;  %v1302_v9 = vmul.f32 %v3092_v56, %v1270_v0 }
 0x308   :  { %v1347_v53 = vmul.f32 0.2, %v1331_v2  ;;  %v1342_v48 = vmul.f32 0.2, %v1326_v51  ;;  %v1357_v7 = vmax.f32 %v1325_v18, %v1341_v33  ;;  %v1332_v5 = vadd.f32 %v3098_v32, %v1300_v42  ;;  %v2504_v42 = vld [vmem:[%s3537_s6] sm:$0xff] }
 0x309   :  { %v1349_v34 = vmul.f32 0.2, %v1333_v57  ;;  %v3137_v30 = vadd.f32 %v1355_v50, %v2819_v29  ;;  %v1345_v62 = vmul.f32 0.2, %v1329_v1  ;;  %v1334_v41 = vadd.f32 %v3098_v32, %v1302_v9 }
 0x30a   :  { %v1363_v55 = vmax.f32 %v1331_v2, %v1347_v53  ;;  %v3141_v13 = vadd.f32 %v1353_v59, %v2823_v46  ;;  %v1338_v23 = vmul.f32 0.2, %v3109_v43  ;;  %v1356_v44 = vmax.f32 %v1324_v27, %v1340_v15  ;;  %v2480_v59 = vld [vmem:[%s3534_s3 + $0x10] sm:$0xff]   ;;  %v2502_v15 = vld [vmem:[%s3537_s6 + $0x18] sm:$0xff] }
 0x30b   :  { %3604 = vst [vmem:[#allocation20_spill] sm:$0xff] %v3137_v30  ;;  %v1360_v37 = vmax.f32 %v1328_v21, %v1344_v60  ;;  %v1348_v54 = vmul.f32 0.2, %v1332_v5  ;;  %1385 = vrot.lane.b32.xlu1 %v3137_v30, %s2588_s2  ;;  %v1359_v56 = vmax.f32 %v1327_v63, %v1343_v19  ;;  %v1362_v61 = vmax.f32 %v1330_v49, %v1346_v52  ;;  %v3615_v21 = vld [vmem:[#allocation26_spill] sm:$0xff]  ;;  %v3617_v63 = vld [vmem:[#allocation28_spill] sm:$0xff]  ;;  %v2503_v60 = vld [vmem:[%s3537_s6 + $0x10] sm:$0xff] }
 0x30c   :  { %3605 = vst [vmem:[#allocation17_spill] sm:$0xff] %v3141_v13  ;;  %v1365_v8 = vmax.f32 %v1333_v57, %v1349_v34  ;;  %v1350_v29 = vmul.f32 0.2, %v1334_v41  ;;  %1399 = vrot.lane.b32.xlu0 %v3141_v13, %s2588_s2  ;;  %v1352_v32 = vmax.f32 %v3107_v24, %v3115_v40  ;;  %v1358_v46 = vmax.f32 %v1326_v51, %v1342_v48  ;;  %v2481_v57 = vld [vmem:[%s3534_s3 + $0x18] sm:$0xff]   ;;  %v2505_v52 = vld [vmem:[%s3537_s6 + $0x8] sm:$0xff] }
 0x30d   :  { %v1364_v4 = vmax.f32 %v1332_v5, %v1348_v54  ;;  %v3151_v17 = vadd.f32 %v1357_v7, %v2832_v45  ;;  %v1361_v12 = vmax.f32 %v1329_v1, %v1345_v62  ;;  %v3154_v14 = vadd.f32 %v1363_v55, %v2830_v10  ;;  %v3607_v45 = vld [vmem:[#allocation21_spill] sm:$0xff]  ;;  %v3608_v10 = vld [vmem:[#allocation24_spill] sm:$0xff] }
 0x30e   :  { %v1366_v11 = vmax.f32 %v1334_v41, %v1350_v29  ;;  %v1354_v18 = vmax.f32 %v3109_v43, %v1338_v23  ;;  %v3158_v3 = vadd.f32 %v1360_v37, %v2835_v35  ;;  %v3166_v24 = vadd.f32 %v1356_v44, %v2845_v58  ;;  %v3610_v35 = vld [vmem:[#allocation25_spill] sm:$0xff]  ;;  %v3613_v58 = vld [vmem:[#allocation27_spill] sm:$0xff] }
 0x30f   :  { %3606 = vst [vmem:[#allocation18_spill] sm:$0xff] %v3151_v17  ;;  %v3161_v25 = vadd.f32 %v1364_v4, %v2837_v36  ;;  %1401 = vrot.lane.b32.xlu1 %v3151_v17, %s2588_s2  ;;  %v3169_v28 = vadd.f32 %v1359_v56, %v3607_v45  ;;  %v3172_v40 = vadd.f32 %v1362_v61, %v3608_v10  ;;  %v3611_v36 = vld [vmem:[#allocation23_spill] sm:$0xff]  ;;  %v3619_v1 = vmov 0   ;;  %v2506_v10 = vld [vmem:[#allocation5 + $0x8] sm:$0x3f] }
 0x310   :  { %v3175_v43 = vadd.f32 %v1365_v8, %v3609_v22  ;;  %v3178_v38 = vadd.f32 %v1366_v11, %v3610_v35  ;;  %1464 = vrot.lane.b32.xlu0 %v3122_v16, %s2589_s29  ;;  %v3183_v26 = vadd.f32 %v1358_v46, %v3611_v36  ;;  %v3186_v31 = vadd.f32 %v1352_v32, %v3613_v58  ;;  %v3621_v46 = vld [vmem:[#allocation15_spill] sm:$0xff] }
 0x311   :  { %v1567_v27 = vpack.c.bf16 %v3161_v25, %v3158_v3  ;;  %v3191_v20 = vadd.f32 %v1361_v12, %v3615_v21  ;;  %v1566_v39 = vpack.c.bf16 %v3154_v14, %v3169_v28  ;;  %v3200_v49 = vadd.f32 %v1354_v18, %v3617_v63  ;;  %v3622_v18 = vld [vmem:[#allocation16_spill] sm:$0xff]  ;;  %v3308_v35 = vld [vmem:[#allocation5 + $0x10] sm:$0x3f] }
 0x312   :  { %3612 = vst [vmem:[#allocation21_spill] sm:$0xff] %v3183_v26  ;;  %3614 = vst [vmem:[#allocation24_spill] sm:$0xff] %v3186_v31  ;;  %v1569_v51 = vpack.c.bf16 %v3178_v38, %v3172_v40  ;;  %v1563_v47 = vpack.c.bf16 %v3166_v24, %v3186_v31  ;;  %v1562_v2 = vpack.c.bf16 %v3137_v30, %v3122_v16  ;;  %v2590_v0 = vmov 4   ;;  %v2509_v63 = vld [vmem:[#allocation5 + $0x18] sm:$0x3f] }
 0x313   :  { %3616 = vst [vmem:[#allocation22_spill] sm:$0xff] %v3191_v20  ;;  %1466 = vrot.lane.b32.xlu1 %v3137_v30, %s2589_s29  ;;  %1598 = vmatprep.subr.bf16.mxu0 %v1567_v27  ;;  %3618 = vst [vmem:[#allocation25_spill] sm:$0xff] %v3200_v49  ;;  %v1568_v33 = vpack.c.bf16 %v3175_v43, %v3191_v20  ;;  %v1565_v50 = vpack.c.bf16 %v3183_v26, %v3200_v49  ;;  %v2591_v53 = vmov 5   ;;  %v3620_v19 = vmov 1  }
 0x314   :  { %1391 = vrot.lane.b32.xlu0 %v3186_v31, %s2588_s2  ;;  %1599 = vmatpush1.bf16.msra.mxu0 %v1566_v39  ;;  %v1564_v6 = vpack.c.bf16 %v3151_v17, %v3141_v13  ;;  %v1434_v4 = vsub.s32 4, %v3621_v46  ;;  %vm1415_vm7 = vcmp.lt.s32.totalorder %v3622_v18, 4  ;;  %v2508_v39 = vld [vmem:[#allocation5] sm:$0x3f]  ;;  %vm1496_vm8 = vcmp.lt.s32.totalorder %v3622_v18, 124  ;;  %v2485_v18 = vld [vmem:[%s3534_s3 + $0x28] sm:$0xff]  }
 0x315   :  { %1651 = vmatprep.subr.bf16.mxu1 %v1569_v51  ;;  %1600 = vmatprep.subr.bf16.mxu0 %v1563_v47 }
 0x316   :  { %1652 = vmatpush1.bf16.msra.mxu1 %v1568_v33  ;;  %2459 = vset.pattern.permute.xlu1 %v2590_v0  ;;  %v1439_v22 = vrot.slane %v2506_v10, %v1434_v4  ;;  %v1443_v36 = vrot.slane %v3308_v35, %v1434_v4  ;;  %v1435_v51 = vrot.slane %v2508_v39, %v1434_v4 }
 0x317   :  { %1393 = vrot.lane.b32.xlu1 %v3166_v24, %s2588_s2  ;;  %1653 = vmatprep.subr.bf16.mxu1 %v1565_v50  ;;  %v1447_v47 = vrot.slane %v2509_v63, %v1434_v4 }
 0x318   :  { %1407 = vrot.lane.b32.xlu0 %v3200_v49, %s2588_s2  ;;  %1601 = vmatpush1.bf16.msra.mxu0 %v1562_v2 }
 0x319   :  { %2458 = vset.pattern.permute.xlu0 %v2590_v0 }
 0x31a   :  { %1654 = vmatpush1.bf16.msra.mxu1 %v1564_v6 }
 0x31b   :  { %1409 = vrot.lane.b32.xlu1 %v3183_v26, %s2588_s2  ;;  %2401 = vmatmul.mubr.msk.bf16.vlgmr.msra.gmra.mxu0 %vm885_vm4, %v2480_v59 }
 0x31c   :  { %1387 = vrot.lane.b32.xlu0 %v3169_v28, %s2588_s2  ;;  %1628 = vmatprep.mubr.bf16.mxu0 %v3619_v1 }
 0x31d   :  { %2403 = vmatmul.mubr.msk.bf16.vlgmr.msra.gmra.mxu1 %vm885_vm4, %v2480_v59 }
 0x31e   :  { %1681 = vmatprep.mubr.bf16.mxu1 %v3619_v1 }
 0x31f   :  { %1389 = vrot.lane.b32.xlu1 %v3154_v14, %s2588_s2 }
 0x320   :  { %1403 = vrot.lane.b32.xlu0 %v3191_v20, %s2588_s2 }
 0x323   :  { %1405 = vrot.lane.b32.xlu1 %v3175_v43, %s2588_s2  ;;  %2402 = vmatmul.mubr.msk.bf16.gmra.mxu0 %vm885_vm4, %v2481_v57 }
 0x324   :  { %1468 = vrot.lane.b32.xlu0 %v3169_v28, %s2589_s29  ;;  %1740 = vmatprep.mubr.bf16.mxu0 %v3619_v1 }
 0x325   :  { %2404 = vmatmul.mubr.msk.bf16.gmra.mxu1 %vm885_vm4, %v2481_v57 }
 0x326   :  { %1793 = vmatprep.mubr.bf16.mxu1 %v3619_v1 }
 0x327   :  { %1470 = vrot.lane.b32.xlu1 %v3154_v14, %s2589_s29 }
 0x328   :  { %1484 = vrot.lane.b32.xlu0 %v3191_v20, %s2589_s29 }
 0x32b   :  { %1486 = vrot.lane.b32.xlu1 %v3175_v43, %s2589_s29 }
 0x32c   :  { %1395 = vrot.lane.b32.xlu0 %v3158_v3, %s2588_s2 }
 0x32f   :  { %1397 = vrot.lane.b32.xlu1 %v3161_v25, %s2588_s2 }
 0x330   :  { %1411 = vrot.lane.b32.xlu0 %v3172_v40, %s2588_s2 }
 0x333   :  { %1413 = vrot.lane.b32.xlu1 %v3178_v38, %s2588_s2 }
 0x334   :  { %1472 = vrot.lane.b32.xlu0 %v3186_v31, %s2589_s29 }
 0x337   :  { %1474 = vrot.lane.b32.xlu1 %v3166_v24, %s2589_s29 }
 0x338   :  { %1476 = vrot.lane.b32.xlu0 %v3158_v3, %s2589_s29 }
 0x33b   :  { %1482 = vrot.lane.b32.xlu1 %v3151_v17, %s2589_s29 }
 0x33c   :  { %1492 = vrot.lane.b32.xlu0 %v3172_v40, %s2589_s29 }
 0x33f   :  { %1478 = vrot.lane.b32.xlu1 %v3161_v25, %s2589_s29 }
 0x340   :  { %1480 = vrot.lane.b32.xlu0 %v3141_v13, %s2589_s29 }
 0x343   :  { %1494 = vrot.lane.b32.xlu1 %v3178_v38, %s2589_s29 }
 0x344   :  { %1488 = vrot.lane.b32.xlu0 %v3200_v49, %s2589_s29 }
 0x347   :  { %1490 = vrot.lane.b32.xlu1 %v3183_v26, %s2589_s29 }
 0x348   :  { %1974 = vperm.xlu0 %2458, %v2503_v60  }
 0x34b   :  { %1978 = vperm.xlu1 %2459, %v2502_v15  }
 0x34c   :  { %2461 = vset.pattern.permute.xlu0 %v2591_v53 }
 0x34d   :  { %2010 = vperm.xlu0 %2461, %v2502_v15  }
 0x34f   :  { %2460 = vset.pattern.permute.xlu1 %v2591_v53 }
 0x350   :  { %2006 = vperm.xlu1 %2460, %v2503_v60  }
 0x351   :  { %1998 = vperm.xlu0 %2461, %v2504_v42  }
 0x354   :  { %2462 = vset.pattern.permute.xlu1 %v2590_v0 }
 0x355   :  { %1966 = vperm.xlu1 %2462, %v2504_v42   ;;  %2464 = vset.pattern.permute.xlu0 %v3620_v19 }
 0x359   :  { %1970 = vperm.xlu1 %2462, %v2505_v52  }
 0x35d   :  { %2463 = vset.pattern.permute.xlu1 %v2591_v53 }
 0x35e   :  { %2002 = vperm.xlu1 %2463, %v2505_v52  }
 0x362   :  { %2465 = vset.pattern.permute.xlu1 %v3619_v1 }
 0x375   :  { %v1384_v34 = vpop.permute.xlu0 %1383 }
 0x37d   :  { %v1386_v9 = vpop.permute.xlu1 %1385 }
 0x37e   :  { %v1400_v48 = vpop.permute.xlu0 %1399 }
 0x381   :  { %v1402_v7 = vpop.permute.xlu1 %1401 }
 0x382   :  { %v3292_v5 = vpop.permute.xlu0 %1464 }
 0x385   :  { %v3294_v62 = vpop.permute.xlu1 %1466 }
 0x386   :  { %v1392_v55 = vpop.permute.xlu0 %1391 }
 0x387   :  { %v1424_v21 = vsel %vm1415_vm7, %v1384_v34, %v1392_v55 }
 0x389   :  { %v1394_v41 = vpop.permute.xlu1 %1393 }
 0x38a   :  { %v1408_v23 = vpop.permute.xlu0 %1407  ;;  %v1425_v58 = vsel %vm1415_vm7, %v1386_v9, %v1394_v41  ;;  %v1421_v0 = vsel %vm1415_vm7, %v1394_v41, %v1402_v7 }
 0x38b   :  { %v1453_v15 = vmul.f32 %v1439_v22, %v1425_v58  ;;  %v1416_v42 = vsel %vm1415_vm7, %v1400_v48, %v1408_v23 }
 0x38d   :  { %v1410_v44 = vpop.permute.xlu1 %1409 }
 0x38e   :  { %v1388_v37 = vpop.permute.xlu0 %1387  ;;  %v1417_v2 = vsel %vm1415_vm7, %v1402_v7, %v1410_v44  ;;  %v1429_v19 = vsel %vm1415_vm7, %v1410_v44, %v1386_v9  ;;  %v1420_v9 = vsel %vm1415_vm7, %v1392_v55, %v1400_v48  ;;  %v1449_v44 = vmul.f32 %v1439_v22, %v1424_v21 }
 0x38f   :  { %v1450_v55 = vmul.f32 %v1443_v36, %v1420_v9 }
 0x391   :  { %v1390_v54 = vpop.permute.xlu1 %1389 }
 0x392   :  { %v1404_v56 = vpop.permute.xlu0 %1403 }
 0x395   :  { %v1406_v61 = vpop.permute.xlu1 %1405 }
 0x396   :  { %v3296_v8 = vpop.permute.xlu0 %1468 }
 0x399   :  { %v3298_v29 = vpop.permute.xlu1 %1470 }
 0x39a   :  { %v3300_v32 = vpop.permute.xlu0 %1484 }
 0x39d   :  { %v3303_v12 = vpop.permute.xlu1 %1486 }
 0x39e   :  { %v1396_v11 = vpop.permute.xlu0 %1395 }
 0x39f   :  { %v1426_v45 = vsel %vm1415_vm7, %v1388_v37, %v1396_v11  ;;  %v1422_v52 = vsel %vm1415_vm7, %v1396_v11, %v1404_v56 }
 0x3a0   :  { %v1457_v6 = vmul.f32 %v1439_v22, %v1426_v45  ;;  %v1458_v11 = vmul.f32 %v1443_v36, %v1422_v52 }
 0x3a1   :  { %v1398_v27 = vpop.permute.xlu1 %1397 }
 0x3a2   :  { %v1427_v33 = vsel %vm1415_vm7, %v1390_v54, %v1398_v27  ;;  %v1412_v50 = vpop.permute.xlu0 %1411  ;;  %v1423_v59 = vsel %vm1415_vm7, %v1398_v27, %v1406_v61  ;;  %v1455_v27 = vmul.f32 %v1447_v47, %v1417_v2  ;;  %v1451_v2 = vmul.f32 %v1447_v47, %v1416_v42 }
 0x3a3   :  { %v1461_v57 = vmul.f32 %v1439_v22, %v1427_v33  ;;  %v1418_v60 = vsel %vm1415_vm7, %v1404_v56, %v1412_v50  ;;  %v1430_v53 = vsel %vm1415_vm7, %v1412_v50, %v1388_v37  ;;  %v1462_v7 = vmul.f32 %v1443_v36, %v1423_v59 }
 0x3a4   :  { %v1456_v33 = vmul.f32 %v1435_v51, %v1430_v53  ;;  %v1459_v50 = vmul.f32 %v1447_v47, %v1418_v60  ;;  %v1428_v56 = vsel %vm1415_vm7, %v1408_v23, %v1384_v34  ;;  %v1550_v60 = vpack.c.bf16 %v1453_v15, %v1449_v44 }
 0x3a5   :  { %v1414_v4 = vpop.permute.xlu1 %1413  ;;  %v1554_v45 = vpack.c.bf16 %v1461_v57, %v1457_v6  ;;  %v1452_v6 = vmul.f32 %v1435_v51, %v1429_v19  ;;  %v1552_v48 = vpack.c.bf16 %v1455_v27, %v1451_v2 }
 0x3a6   :  { %v1419_v41 = vsel %vm1415_vm7, %v1406_v61, %v1414_v4  ;;  %v1431_v58 = vsel %vm1415_vm7, %v1414_v4, %v1390_v54  ;;  %v1473_v37 = vpop.permute.xlu0 %1472  ;;  %v1454_v54 = vmul.f32 %v1443_v36, %v1421_v0  ;;  %v1555_v4 = vpack.c.bf16 %v1462_v7, %v1458_v11  ;;  %v2482_v36 = vld [vmem:[%s3534_s3] sm:$0xff]  }
 0x3a7   :  { %v1460_v13 = vmul.f32 %v1435_v51, %v1431_v58  ;;  %v1463_v16 = vmul.f32 %v1447_v47, %v1419_v41  ;;  %1720 = vmatprep.subr.bf16.mxu0 %v1554_v45  ;;  %v1448_v58 = vmul.f32 %v1435_v51, %v1428_v56  ;;  %v1515_v45 = vsub.s32 5, %v3621_v46 }
 0x3a9   :  { %v1553_v61 = vpack.c.bf16 %v1460_v13, %v1456_v33  ;;  %v1475_v59 = vpop.permute.xlu1 %1474  ;;  %v1556_v57 = vpack.c.bf16 %v1463_v16, %v1459_v50  ;;  %v1549_v34 = vpack.c.bf16 %v1452_v6, %v1448_v58  ;;  %v1520_v23 = vrot.slane %v2506_v10, %v1515_v45 }
 0x3aa   :  { %v1477_v53 = vpop.permute.xlu0 %1476  ;;  %v1551_v16 = vpack.c.bf16 %v1454_v54, %v1450_v55  ;;  %v1516_v51 = vrot.slane %v2508_v39, %v1515_v45  ;;  %v1524_v10 = vrot.slane %v3308_v35, %v1515_v45  ;;  %v1528_v47 = vrot.slane %v2509_v63, %v1515_v45 }
 0x3ab   :  { %1721 = vmatpush1.bf16.msra.mxu0 %v1553_v61  ;;  %1773 = vmatprep.subr.bf16.mxu1 %v1556_v57  ;;  %v1503_v22 = vsel %vm1496_vm8, %v1477_v53, %v3300_v32  ;;  %v1507_v46 = vsel %vm1496_vm8, %v3296_v8, %v1477_v53  ;;  %v1506_v0 = vsel %vm1496_vm8, %v3294_v62, %v1475_v59 }
 0x3ac   :  { %1722 = vmatprep.subr.bf16.mxu0 %v1550_v60  ;;  %1774 = vmatpush1.bf16.msra.mxu1 %v1555_v4  ;;  %v1537_v15 = vmul.f32 %v1516_v51, %v1507_v46  ;;  %v1538_v42 = vmul.f32 %v1520_v23, %v1503_v22  ;;  %v1533_v9 = vmul.f32 %v1516_v51, %v1506_v0 }
 0x3ad   :  { %v1483_v13 = vpop.permute.xlu1 %1482  ;;  %1775 = vmatprep.subr.bf16.mxu1 %v1552_v48 }
 0x3ae   :  { %v1493_v21 = vpop.permute.xlu0 %1492  ;;  %v1502_v19 = vsel %vm1496_vm8, %v1475_v59, %v1483_v13 }
 0x3af   :  { %1723 = vmatpush1.bf16.msra.mxu0 %v1549_v34  ;;  %v1499_v27 = vsel %vm1496_vm8, %v3300_v32, %v1493_v21  ;;  %v1511_v35 = vsel %vm1496_vm8, %v1493_v21, %v3296_v8  ;;  %v1505_v8 = vsel %vm1496_vm8, %v3292_v5, %v1473_v37  ;;  %v1534_v44 = vmul.f32 %v1520_v23, %v1502_v19 }
 0x3b0   :  { %1776 = vmatpush1.bf16.msra.mxu1 %v1551_v16  ;;  %v1539_v6 = vmul.f32 %v1524_v10, %v1499_v27  ;;  %v1540_v61 = vmul.f32 %v1528_v47, %v1511_v35  ;;  %v1529_v45 = vmul.f32 %v1516_v51, %v1505_v8 }
 0x3b1   :  { %v1479_v52 = vpop.permute.xlu1 %1478 }
 0x3b2   :  { %v1504_v39 = vsel %vm1496_vm8, %v1479_v52, %v3303_v12  ;;  %v1508_v63 = vsel %vm1496_vm8, %v3298_v29, %v1479_v52  ;;  %v1481_v7 = vpop.permute.xlu0 %1480  ;;  %2407 = vmatmul.mubr.msk.bf16.vlgmr.msra.gmra.mxu0 %vm885_vm4, %v2482_v36  ;;  %v1819_v34 = vpack.c.bf16 %v1533_v9, %v1529_v45 }
 0x3b3   :  { %v1541_v41 = vmul.f32 %v1516_v51, %v1508_v63  ;;  %v1542_v33 = vmul.f32 %v1520_v23, %v1504_v39  ;;  %v1501_v32 = vsel %vm1496_vm8, %v1473_v37, %v1481_v7  ;;  %2409 = vmatmul.mubr.msk.bf16.vlgmr.msra.gmra.mxu1 %vm885_vm4, %v2482_v36  ;;  %1750 = vmatprep.mubr.bf16.mxu0 %v3619_v1  ;;  %v2483_v37 = vld [vmem:[%s3534_s3 + $0x8] sm:$0xff]  }
 0x3b4   :  { %v1530_v50 = vmul.f32 %v1520_v23, %v1501_v32  ;;  %1803 = vmatprep.mubr.bf16.mxu1 %v3619_v1 }
 0x3b5   :  { %v1823_v56 = vpack.c.bf16 %v1541_v41, %v1537_v15  ;;  %v1495_v11 = vpop.permute.xlu1 %1494  ;;  %v1824_v2 = vpack.c.bf16 %v1542_v33, %v1538_v42 }
 0x3b6   :  { %v1500_v59 = vsel %vm1496_vm8, %v3303_v12, %v1495_v11  ;;  %v1512_v57 = vsel %vm1496_vm8, %v1495_v11, %v3298_v29  ;;  %v1489_v54 = vpop.permute.xlu0 %1488  ;;  %v1820_v58 = vpack.c.bf16 %v1534_v44, %v1530_v50 }
 0x3b7   :  { %v1543_v4 = vmul.f32 %v1524_v10, %v1500_v59  ;;  %v1544_v53 = vmul.f32 %v1528_v47, %v1512_v57  ;;  %v1497_v60 = vsel %vm1496_vm8, %v1481_v7, %v1489_v54  ;;  %1855 = vmatprep.subr.bf16.mxu0 %v1824_v2  ;;  %v1509_v12 = vsel %vm1496_vm8, %v1489_v54, %v3292_v5 }
 0x3b8   :  { %1856 = vmatpush1.bf16.msra.mxu0 %v1823_v56  ;;  %v1531_v23 = vmul.f32 %v1524_v10, %v1497_v60  ;;  %v1532_v46 = vmul.f32 %v1528_v47, %v1509_v12 }
 0x3b9   :  { %v1825_v48 = vpack.c.bf16 %v1543_v4, %v1539_v6  ;;  %v1491_v29 = vpop.permute.xlu1 %1490  ;;  %1857 = vmatprep.subr.bf16.mxu0 %v1820_v58  ;;  %v1826_v55 = vpack.c.bf16 %v1544_v53, %v1540_v61 }
 0x3ba   :  { %v1498_v16 = vsel %vm1496_vm8, %v1483_v13, %v1491_v29  ;;  %v1510_v22 = vsel %vm1496_vm8, %v1491_v29, %v3294_v62  ;;  %2408 = vmatmul.mubr.msk.bf16.gmra.mxu0 %vm885_vm4, %v2483_v37  ;;  %v2484_v62 = vld [vmem:[%s3534_s3 + $0x20] sm:$0xff]  }
 0x3bb   :  { %v1535_v21 = vmul.f32 %v1524_v10, %v1498_v16  ;;  %v1536_v36 = vmul.f32 %v1528_v47, %v1510_v22  ;;  %2410 = vmatmul.mubr.msk.bf16.gmra.mxu1 %vm885_vm4, %v2483_v37  ;;  %1908 = vmatprep.subr.bf16.mxu1 %v1826_v55  ;;  %v2086_v13 = vld [vmem:[%s3538_s7] sm:$0xf] }
 0x3bc   :  { %1858 = vmatpush1.bf16.msra.mxu0 %v1819_v34  ;;  %1909 = vmatpush1.bf16.msra.mxu1 %v1825_v48 }
 0x3bd   :  { %v1821_v5 = vpack.c.bf16 %v1535_v21, %v1531_v23  ;;  %v1822_v51 = vpack.c.bf16 %v1536_v36, %v1532_v46  ;;  %1875 = vmatprep.mubr.bf16.mxu0 %v3619_v1  ;;  %1928 = vmatprep.mubr.bf16.mxu1 %v3619_v1 }
 0x3be   :  { %2179 = vperm.xlu0 %2464, %v2086_v13   ;;  %2089 = vperm.xlu1 %2465, %v2086_v13  }
 0x3bf   :  { %1910 = vmatprep.subr.bf16.mxu1 %v1822_v51 }
 0x3c0   :  { %1911 = vmatpush1.bf16.msra.mxu1 %v1821_v5 }
 0x3c2   :  { %2417 = vmatmul.mubr.msk.bf16.vlgmr.msra.gmra.mxu0 %vm885_vm4, %v2484_v62 }
 0x3c3   :  { %2419 = vmatmul.mubr.msk.bf16.vlgmr.msra.gmra.mxu1 %vm885_vm4, %v2484_v62  ;;  %1885 = vmatprep.mubr.bf16.mxu0 %v3619_v1  ;;  %v3429_v59 = vpop.permute.xlu0 %1974 }
 0x3c4   :  { %1938 = vmatprep.mubr.bf16.mxu1 %v3619_v1 }
 0x3c6   :  { %v3427_v11 = vpop.permute.xlu1 %1978 }
 0x3c8   :  { %v3433_v45 = vpop.permute.xlu0 %2010 }
 0x3ca   :  { %2418 = vmatmul.mubr.msk.bf16.gmra.mxu0 %vm885_vm4, %v2485_v18 }
 0x3cb   :  { %2420 = vmatmul.mubr.msk.bf16.gmra.mxu1 %vm885_vm4, %v2485_v18  ;;  %2127 = vmatprep.mubr.bf16.mxu0 %v3619_v1  ;;  %v3431_v4 = vpop.permute.xlu1 %2006 }
 0x3cc   :  { %2168 = vmatprep.mubr.bf16.mxu1 %v3619_v1  ;;  %v1999_v62 = vpop.permute.xlu0 %1998 }
 0x3d0   :  { %v1967_v34 = vpop.permute.xlu1 %1966 }
 0x3db   :  { %v1620_v10 = vpop.f32.mrf.mxu0 }
 0x3dd   :  { %v1673_v47 = vpop.f32.mrf.mxu1  ;;  %v1622_v0 = vpop.f32.mrf.mxu0 }
 0x3df   :  { %v1675_v15 = vpop.f32.mrf.mxu1  ;;  %v1624_v42 = vpop.f32.mrf.mxu0 }
 0x3e1   :  { %v1677_v19 = vpop.f32.mrf.mxu1  ;;  %v1626_v52 = vpop.f32.mrf.mxu0 }
 0x3e3   :  { %v1679_v27 = vpop.f32.mrf.mxu1  ;;  %v1630_v35 = vpop.f32.mrf.mxu0 }
 0x3e5   :  { %v1683_v39 = vpop.f32.mrf.mxu1  ;;  %v1632_v63 = vpop.f32.mrf.mxu0 }
 0x3e7   :  { %v1685_v7 = vpop.f32.mrf.mxu1  ;;  %v3419_v41 = vpop.f32.mrf.mxu0 }
 0x3e9   :  { %v3421_v33 = vpop.f32.mrf.mxu1  ;;  %v3423_v32 = vpop.f32.mrf.mxu0 }
 0x3eb   :  { %v3425_v8 = vpop.f32.mrf.mxu1 }
 0x472   :  { %v1742_v50 = vpop.f32.mrf.mxu0 }
 0x473   :  { %v1795_v9 = vpop.f32.mrf.mxu1  ;;  %v1743_v29 = vadd.f32 %v1742_v50, %v1620_v10  ;;  %v1971_v50 = vpop.permute.xlu1 %1970 }
 0x474   :  { %v1744_v44 = vpop.f32.mrf.mxu0  ;;  %v1796_v23 = vadd.f32 %v1795_v9, %v1673_v47 }
 0x475   :  { %v1797_v56 = vpop.f32.mrf.mxu1  ;;  %v1745_v22 = vadd.f32 %v1744_v44, %v1622_v0 }
 0x476   :  { %v1746_v2 = vpop.f32.mrf.mxu0  ;;  %v1798_v36 = vadd.f32 %v1797_v56, %v1675_v15 }
 0x477   :  { %v1799_v6 = vpop.f32.mrf.mxu1  ;;  %v1747_v17 = vadd.f32 %v1746_v2, %v1624_v42 }
 0x478   :  { %v1748_v61 = vpop.f32.mrf.mxu0  ;;  %v1800_v0 = vadd.f32 %v1799_v6, %v1677_v19 }
 0x479   :  { %v1801_v57 = vpop.f32.mrf.mxu1  ;;  %v1749_v20 = vadd.f32 %v1748_v61, %v1626_v52 }
 0x47a   :  { %v1752_v54 = vpop.f32.mrf.mxu0  ;;  %v1802_v9 = vadd.f32 %v1801_v57, %v1679_v27 }
 0x47b   :  { %v1805_v37 = vpop.f32.mrf.mxu1  ;;  %v1753_v56 = vadd.f32 %v1752_v54, %v1630_v35 }
 0x47c   :  { %v1754_v53 = vpop.f32.mrf.mxu0 }
 0x47d   :  { %v1807_v60 = vpop.f32.mrf.mxu1  ;;  %v1755_v52 = vadd.f32 %v1754_v53, %v1632_v63  ;;  %v2003_v63 = vpop.permute.xlu1 %2002 }
 0x47e   :  { %v1756_v58 = vpop.f32.mrf.mxu0  ;;  %v1808_v61 = vadd.f32 %v1807_v60, %v1685_v7 }
 0x47f   :  { %v1809_v12 = vpop.f32.mrf.mxu1 }
 0x480   :  { %v1758_v48 = vpop.f32.mrf.mxu0 }
 0x481   :  { %v1811_v55 = vpop.f32.mrf.mxu1 }
 0x482   :  { %v1877_v16 = vpop.f32.mrf.mxu0  ;;  %v1812_v57 = vadd.f32 %v1811_v55, %v3425_v8 }
 0x483   :  { %v1949_v46 = vadd.f32 %v1877_v16, %v1743_v29  ;;  %v1930_v21 = vpop.f32.mrf.mxu1 }
 0x484   :  { %v1951_v5 = vadd.f32 %v1930_v21, %v1796_v23  ;;  %v1879_v51 = vpop.f32.mrf.mxu0 }
 0x485   :  { %v1981_v18 = vmul.f32 %v1967_v34, %v1949_v46  ;;  %v1950_v13 = vadd.f32 %v1879_v51, %v1745_v22  ;;  %v1932_v1 = vpop.f32.mrf.mxu1  ;;  %v1806_v22 = vadd.f32 %v1805_v37, %v1683_v39 }
 0x486   :  { %v1983_v30 = vmul.f32 %v1967_v34, %v1951_v5  ;;  %v1952_v49 = vadd.f32 %v1932_v1, %v1798_v36  ;;  %v1881_v31 = vpop.f32.mrf.mxu0 }
 0x487   :  { %v1982_v10 = vmul.f32 %v1967_v34, %v1950_v13  ;;  %v3435_v26 = vadd.f32 %v1999_v62, %v1981_v18  ;;  %v1934_v47 = vpop.f32.mrf.mxu1  ;;  %v1953_v44 = vadd.f32 %v1881_v31, %v1747_v17  ;;  %v1757_v17 = vadd.f32 %v1756_v58, %v3419_v41 }
 0x488   :  { %v1883_v15 = vpop.f32.mrf.mxu0  ;;  %v1984_v29 = vmul.f32 %v1967_v34, %v1952_v49  ;;  %v3437_v46 = vadd.f32 %v1999_v62, %v1983_v30  ;;  %v1955_v42 = vadd.f32 %v1934_v47, %v1800_v0  ;;  %v1810_v31 = vadd.f32 %v1809_v12, %v3421_v33 }
 0x489   :  { %v1954_v23 = vadd.f32 %v1883_v15, %v1749_v20  ;;  %v1936_v16 = vpop.f32.mrf.mxu1  ;;  %v3439_v21 = vadd.f32 %v1999_v62, %v1982_v10  ;;  %v3442_v36 = vmul.f32 0.2, %v3435_v26  ;;  %v1985_v20 = vmul.f32 %v1971_v50, %v1953_v44 }
 0x48a   :  { %v1956_v1 = vadd.f32 %v1936_v16, %v1802_v9  ;;  %v1887_v2 = vpop.f32.mrf.mxu0  ;;  %v1759_v30 = vadd.f32 %v1758_v48, %v3423_v32  ;;  %v3447_v35 = vadd.f32 %v1999_v62, %v1984_v29  ;;  %v3451_v54 = vmul.f32 0.2, %v3437_v46 }
 0x48b   :  { %v1940_v19 = vpop.f32.mrf.mxu1  ;;  %v1986_v49 = vmul.f32 %v1971_v50, %v1954_v23  ;;  %v1957_v7 = vadd.f32 %v1887_v2, %v1753_v56  ;;  %v1987_v37 = vmul.f32 %v1971_v50, %v1955_v42  ;;  %v3454_v33 = vmul.f32 0.2, %v3439_v21 }
 0x48c   :  { %v1889_v27 = vpop.f32.mrf.mxu0  ;;  %v1988_v39 = vmul.f32 %v1971_v50, %v1956_v1  ;;  %v1959_v41 = vadd.f32 %v1940_v19, %v1806_v22  ;;  %v2045_v32 = vmax.f32 %v3435_v26, %v3442_v36  ;;  %v3459_v48 = vadd.f32 %v2003_v63, %v1985_v20  ;;  %v3633_v26 = vld [vmem:[#allocation13_spill] sm:$0xff]  ;;  %v3634_v36 = vld [vmem:[#allocation14_spill] sm:$0xff] }
 0x48d   :  { %v1942_v6 = vpop.f32.mrf.mxu1  ;;  %v1989_v60 = vmul.f32 %v3429_v59, %v1957_v7  ;;  %v1958_v58 = vadd.f32 %v1889_v27, %v1755_v52  ;;  %v2018_v34 = vadd.f32 %v2003_v63, %v1986_v49  ;;  %v3463_v51 = vmul.f32 0.2, %v3447_v35 }
 0x48e   :  { %v1891_v53 = vpop.f32.mrf.mxu0  ;;  %v1991_v8 = vmul.f32 %v3429_v59, %v1959_v41  ;;  %v1960_v55 = vadd.f32 %v1942_v6, %v1808_v61  ;;  %v2020_v62 = vadd.f32 %v2003_v63, %v1988_v39  ;;  %v3466_v50 = vadd.f32 %v2003_v63, %v1987_v37 }
 0x48f   :  { %v1944_v12 = vpop.f32.mrf.mxu1  ;;  %v1990_v18 = vmul.f32 %v3429_v59, %v1958_v58  ;;  %v1961_v13 = vadd.f32 %v1891_v53, %v1757_v17  ;;  %v2021_v47 = vadd.f32 %v3431_v4, %v1989_v60  ;;  %v2034_v23 = vmul.f32 0.2, %v2018_v34 }
 0x490   :  { %v1893_v5 = vpop.f32.mrf.mxu0  ;;  %v1992_v0 = vmul.f32 %v3429_v59, %v1960_v55  ;;  %v1963_v9 = vadd.f32 %v1944_v12, %v1810_v31  ;;  %v2023_v44 = vadd.f32 %v3431_v4, %v1991_v8  ;;  %v2036_v1 = vmul.f32 0.2, %v2020_v62 }
 0x491   :  { %v1946_v10 = vpop.f32.mrf.mxu1  ;;  %v2022_v15 = vadd.f32 %v3431_v4, %v1990_v18  ;;  %v1993_v56 = vmul.f32 %v3427_v11, %v1961_v13  ;;  %v1962_v29 = vadd.f32 %v1893_v5, %v1759_v30  ;;  %v2037_v61 = vmul.f32 0.2, %v2021_v47 }
 0x492   :  { %v2024_v16 = vadd.f32 %v3431_v4, %v1992_v0  ;;  %v1995_v22 = vmul.f32 %v3427_v11, %v1963_v9  ;;  %v1964_v42 = vadd.f32 %v1946_v10, %v1812_v57  ;;  %v2033_v20 = vmul.f32 0.2, %v3459_v48 }
 0x493   :  { %v2038_v2 = vmul.f32 0.2, %v2022_v15  ;;  %v2025_v52 = vadd.f32 %v3433_v45, %v1993_v56  ;;  %v1994_v59 = vmul.f32 %v3427_v11, %v1962_v29  ;;  %v2039_v49 = vmul.f32 0.2, %v2023_v44  ;;  %v3626_v56 = vld [vmem:[#allocation25_spill] sm:$0xff]  ;;  %v3627_v29 = vld [vmem:[#allocation20_spill] sm:$0xff] }
 0x494   :  { %v2040_v19 = vmul.f32 0.2, %v2024_v16  ;;  %v2027_v17 = vadd.f32 %v3433_v45, %v1995_v22  ;;  %v1996_v31 = vmul.f32 %v3427_v11, %v1964_v42  ;;  %v2035_v30 = vmul.f32 0.2, %v3466_v50  ;;  %v3630_v42 = vld [vmem:[#allocation17_spill] sm:$0xff] }
 0x495   :  { %v2041_v27 = vmul.f32 0.2, %v2025_v52  ;;  %v2026_v4 = vadd.f32 %v3433_v45, %v1994_v59  ;;  %v2050_v39 = vmax.f32 %v2018_v34, %v2034_v23  ;;  %v2052_v6 = vmax.f32 %v2020_v62, %v2036_v1  ;;  %v2077_v59 = vld [vmem:[%s3535_s4] sm:$0x3] }
 0x496   :  { %v2043_v63 = vmul.f32 0.2, %v2027_v17  ;;  %v2028_v7 = vadd.f32 %v3433_v45, %v1996_v31  ;;  %v2054_v57 = vmax.f32 %v2022_v15, %v2038_v2  ;;  %v2053_v53 = vmax.f32 %v2021_v47, %v2037_v61  ;;  %v3631_v61 = vld [vmem:[#allocation11_spill] sm:$0xff] }
 0x497   :  { %v2057_v37 = vmax.f32 %v2025_v52, %v2041_v27  ;;  %v2042_v41 = vmul.f32 0.2, %v2026_v4  ;;  %v2056_v60 = vmax.f32 %v2024_v16, %v2040_v19  ;;  %v2046_v12 = vmax.f32 %v3439_v21, %v3454_v33  ;;  %v3632_v19 = vld [vmem:[#allocation12_spill] sm:$0xff] }
 0x498   :  { %v2059_v58 = vmax.f32 %v2027_v17, %v2043_v63  ;;  %v2044_v11 = vmul.f32 0.2, %v2028_v7  ;;  %v2048_v8 = vmax.f32 %v3447_v35, %v3463_v51  ;;  %v2055_v55 = vmax.f32 %v2023_v44, %v2039_v49  ;;  %v3625_v44 = vld [vmem:[#allocation24_spill] sm:$0xff]  ;;  %v2177_v17 = vld [vmem:[%s3536_s5] sm:$0x3]  ;;  %v2180_v63 = vpop.permute.xlu0 %2179  ;;  %s2592_s5 = smov [#allocation7]  }
 0x499   :  { %v2058_v5 = vmax.f32 %v2026_v4, %v2042_v41  ;;  %v2049_v34 = vmax.f32 %v3459_v48, %v2033_v20  ;;  %v2051_v45 = vmax.f32 %v3466_v50, %v2035_v30  ;;  %v2073_v62 = vadd.f32 %v2057_v37, %v3154_v14  ;;  %v3623_v48 = vld [vmem:[#allocation21_spill] sm:$0xff]  ;;  %v3624_v50 = vld [vmem:[#allocation22_spill] sm:$0xff]  ;;  %s2327_s28 = sshll.u32 %s2592_s5, 4  ;;  %s2328_s28 = int_to_ptr.vmem [resolvable:$true] %s2327_s28 }
 0x49a   :  { %v2060_v18 = vmax.f32 %v2028_v7, %v2044_v11  ;;  %v2075_v13 = vadd.f32 %v2059_v58, %v3175_v43  ;;  %v2070_v10 = vadd.f32 %v2054_v57, %v3158_v3  ;;  %v2066_v21 = vadd.f32 %v2050_v39, %v3166_v24  ;;  %s2552_s2 = scalar_lea.vmem %s2328_s28, 256  ;;  %p2557_p11 = scmp.lt.s32.totalorder %s2328_s28, %s2328_s28 }
 0x49b   :  { %v2074_v47 = vadd.f32 %v2058_v5, %v3161_v25  ;;  %v2069_v33 = vadd.f32 %v2053_v53, %v3169_v28  ;;  %v2072_v35 = vadd.f32 %v2056_v60, %v3172_v40  ;;  %v2068_v0 = vadd.f32 %v2052_v6, %v3623_v48  ;;  %p2553_p10 = scmp.ne.s32.totalorder %s2328_s28, %s2552_s2  ;;  %p2558_p12 = scmp.lt.s32.totalorder %s2552_s2, %s2552_s2 }
 0x49c   :  { %v2076_v51 = vadd.f32 %v2060_v18, %v3178_v38  ;;  %v2047_v14 = vmax.f32 %v3437_v46, %v3451_v54  ;;  %v2071_v9 = vadd.f32 %v2055_v55, %v3624_v50  ;;  %v2062_v3 = vadd.f32 %v2046_v12, %v3625_v44  ;;  %v3628_v38 = vld [vmem:[#allocation18_spill] sm:$0xff]  ;;  %v3629_v46 = vld [vmem:[#allocation19_spill] sm:$0xff] }
 0x49d   :  { %v2083_v43 = vpack.c.bf16 %v2074_v47, %v2070_v10  ;;  %v2082_v15 = vpack.c.bf16 %v2073_v62, %v2069_v33  ;;  %v2064_v24 = vadd.f32 %v2048_v8, %v3626_v56  ;;  %v2065_v28 = vadd.f32 %v2049_v34, %v3627_v29  ;;  %p2559_p13 = por %p2558_p12, %p2557_p11 }
 0x49e   :  { %v2085_v25 = vpack.c.bf16 %v2076_v51, %v2072_v35  ;;  %v2079_v40 = vpack.c.bf16 %v2066_v21, %v2062_v3  ;;  %v2084_v23 = vpack.c.bf16 %v2075_v13, %v2071_v9  ;;  %v2067_v16 = vadd.f32 %v2051_v45, %v3628_v38 }
 0x49f   :  { %2107 = vmatprep.subr.bf16.mxu0 %v2083_v43  ;;  %v2081_v22 = vpack.c.bf16 %v2068_v0, %v2064_v24  ;;  %v2061_v54 = vadd.f32 %v2045_v32, %v3629_v46  ;;  %v2063_v1 = vadd.f32 %v2047_v14, %v3630_v42  ;;  %v3635_v32 = vmov 0   ;;  %v2090_v14 = vpop.permute.xlu1 %2089  ;;  %p2560_p0 = pnand %p2559_p13, %p2553_p10 }
 0x4a0   :  { %2108 = vmatpush1.bf16.msra.mxu0 %v2082_v15  ;;  %2148 = vmatprep.subr.bf16.mxu1 %v2085_v25 }
 0x4a1   :  { %2109 = vmatprep.subr.bf16.mxu0 %v2079_v40  ;;  %2149 = vmatpush1.bf16.msra.mxu1 %v2084_v23  ;;  %v2078_v2 = vpack.c.bf16 %v2065_v28, %v2061_v54  ;;  %v2080_v52 = vpack.c.bf16 %v2067_v16, %v2063_v1  ;;  %v2510_v54 = vld [vmem:[#allocation2] sm:$0xff] }
 0x4a2   :  { %2150 = vmatprep.subr.bf16.mxu1 %v2081_v22 }
 0x4a4   :  { %2110 = vmatpush1.bf16.msra.mxu0 %v2078_v2  ;;  %v2511_v2 = vld [vmem:[#allocation2 + $0x8] sm:$0xff] }
 0x4a5   :  { %2151 = vmatpush1.bf16.msra.mxu1 %v2080_v52  ;;  %2423 = vmatprep.subr.msk.bf16.mxu0 %vm176_vm0, %v3631_v61 }
 0x4a6   :  { %2425 = vmatprep.subr.msk.bf16.mxu1 %vm176_vm0, %v3632_v19 }
 0x4a7   :  { %2421 = vmatmul.mubr.msk.bf16.vlgmr.msra.gmra.mxu0 %vm885_vm4, %v2077_v59 }
 0x4a8   :  { %2422 = vmatmul.mubr.msk.bf16.vlgmr.msra.gmra.mxu1 %vm885_vm4, %v2077_v59  ;;  %2200 = vmatpush1.bf16.msra.mxu0 %v3633_v26 }
 0x4a9   :  { %2241 = vmatpush1.bf16.msra.mxu1 %v3634_v36  ;;  %2217 = vmatprep.mubr.bf16.mxu0 %v3635_v32 }
 0x4aa   :  { %2258 = vmatprep.mubr.bf16.mxu1 %v3635_v32 }
 0x4af   :  { %2424 = vmatmul.mubr.msk.bf16.vlgmr.msra.gmra.mxu0 %vm169_vm1, %v2177_v17 }
 0x4b0   :  { %2426 = vmatmul.mubr.msk.bf16.vlgmr.msra.gmra.mxu1 %vm169_vm1, %v2177_v17 }
 0x567   :  { %v2129_v31 = vpop.f32.mrf.mxu0 }
 0x568   :  { %v2170_v20 = vpop.f32.mrf.mxu1  ;;  %v2130_v15 = vadd.f32 %v2129_v31, %v2090_v14 }
 0x569   :  { %v2131_v49 = vpop.f32.mrf.mxu0  ;;  %v2171_v29 = vadd.f32 %v2170_v20, %v2090_v14 }
 0x56a   :  { %v2172_v27 = vpop.f32.mrf.mxu1  ;;  %v2132_v25 = vadd.f32 %v2131_v49, %v2090_v14 }
 0x56b   :  { %v2133_v4 = vpop.f32.mrf.mxu0  ;;  %v2173_v28 = vadd.f32 %v2172_v27, %v2090_v14 }
 0x56c   :  { %v2174_v30 = vpop.f32.mrf.mxu1 }
 0x56d   :  { %v2134_v39 = vpop.f32.mrf.mxu0 }
 0x56e   :  { %v2175_v7 = vpop.f32.mrf.mxu1 }
 0x56f   :  { %v2219_v6 = vpop.f32.mrf.mxu0 }
 0x570   :  { %v2220_v57 = vadd.f32 %v2219_v6, %v2180_v63  ;;  %v2260_v37 = vpop.f32.mrf.mxu1 }
 0x571   :  { %v2261_v41 = vadd.f32 %v2260_v37, %v2180_v63  ;;  %v2221_v53 = vpop.f32.mrf.mxu0 }
 0x572   :  { %v2427_v60 = vmul.f32 -1.442695, %v2220_v57  ;;  %v2222_v58 = vadd.f32 %v2221_v53, %v2180_v63  ;;  %v2262_v11 = vpop.f32.mrf.mxu1 }
 0x573   :  { %v2429_v12 = vmul.f32 -1.442695, %v2261_v41  ;;  %v2263_v8 = vadd.f32 %v2262_v11, %v2180_v63  ;;  %v2223_v55 = vpop.f32.mrf.mxu0 }
 0x574   :  { %2486 = vpow2.f32 %v2427_v60  ;;  %v2428_v5 = vmul.f32 -1.442695, %v2222_v58  ;;  %v2264_v34 = vpop.f32.mrf.mxu1 }
 0x575   :  { %2488 = vpow2.f32 %v2429_v12  ;;  %v2430_v45 = vmul.f32 -1.442695, %v2263_v8  ;;  %v2224_v62 = vpop.f32.mrf.mxu0 }
 0x576   :  { %2490 = vpow2.f32 %v2428_v5  ;;  %v2265_v18 = vpop.f32.mrf.mxu1 }
 0x577   :  { %2492 = vpow2.f32 %v2430_v45 }
 0x581   :  { %v2487_v13 = vpop.eup %2486 }
 0x582   :  { %v2489_v10 = vpop.eup %2488  ;;  %v2279_v47 = vadd.f32 1.0, %v2487_v13 }
 0x583   :  { %v2491_v21 = vpop.eup %2490  ;;  %v2281_v33 = vadd.f32 1.0, %v2489_v10 }
 0x584   :  { %v2493_v35 = vpop.eup %2492  ;;  %2494 = vrcp.f32 %v2279_v47  ;;  %v2280_v51 = vadd.f32 1.0, %v2491_v21 }
 0x585   :  { %2496 = vrcp.f32 %v2281_v33  ;;  %v2282_v48 = vadd.f32 1.0, %v2493_v35 }
 0x586   :  { %2498 = vrcp.f32 %v2280_v51 }
 0x587   :  { %2500 = vrcp.f32 %v2282_v48 }
 0x591   :  { %v2495_v0 = vpop.eup %2494 }
 0x592   :  { %v2497_v50 = vpop.eup %2496  ;;  %v2301_v9 = vsub.f32 1.0, %v2495_v0 }
 0x593   :  { %v2499_v43 = vpop.eup %2498  ;;  %v2303_v44 = vsub.f32 1.0, %v2497_v50 }
 0x594   :  { %v2501_v3 = vpop.eup %2500  ;;  %v2302_v56 = vsub.f32 1.0, %v2499_v43  ;;  %v2295_v24 = vcombine.low %v2495_v0, %v2499_v43  ;;  %v2305_v38 = vmul.f32 %v2301_v9, %v2130_v15 }
 0x595   :  { %v2304_v40 = vsub.f32 1.0, %v2501_v3  ;;  %v2296_v23 = vcombine.low %v2497_v50, %v2501_v3  ;;  %v2307_v22 = vmul.f32 %v2303_v44, %v2171_v29 }
 0x596   :  { %v2306_v16 = vmul.f32 %v2302_v56, %v2132_v25  ;;  %v2299_v42 = vmul.f32 %v2510_v54, %v2295_v24 }
 0x597   :  { %v2308_v46 = vmul.f32 %v2304_v40, %v2173_v28  ;;  %v2300_v52 = vmul.f32 %v2511_v2, %v2296_v23 }
 0x598   :  { %v2313_v1 = vcombine.low %v2305_v38, %v2306_v16 }
 0x599   :  { %v2314_v59 = vcombine.low %v2307_v22, %v2308_v46 }
 0x59a   :  { %v2317_v61 = vadd.f32 %v2313_v1, %v2299_v42 }
 0x59b   :  { %v2318_v19 = vadd.f32 %v2314_v59, %v2300_v52 }
 0x59c   :  { %2319 = vst [vmem:[#allocation7] sm:$0xff] %v2317_v61 }
 0x59d   :  { %2320 = vst [vmem:[#allocation7 + $0x8] sm:$0xff] %v2318_v19 }
 0x59e   :  { %2563 = shalt.err (!%p2560_p0)
}
 0x59f   :  { %2330 = dma.vmem_to_hbm [thread:$0]  %s2328_s28, 256, %s3540_s9, [#allocation4]  }
 0x5a0   :  { %2576 = dma.done.wait [#allocation4], 256  }
 0x5a1   :  { %2577 = vsyncadd [#allocation4], 4294967040 }
 0x5a2   :  { %2334 = vsyncpa [#allocation3], 1 }
 0x5a3   :  { %2335 = vsyncpa [#allocation6], 1 }
 0x5a4   :  { %2336 = vsyncpa [#allocation4], 1 }

</bundles_post_ra>
